<compile_context>
chip_gen: v6e
topology: v6e:2x2x1
jax: 0.10.0
libtpu: 0.0.40
codegen_flags: <defaults>
</compile_context>

<pallas_src>
import jax
import jax.numpy as jnp
from jax.experimental import pallas as pl
from jax.experimental.pallas import tpu as pltpu


# ----------------------------------------------------------------------------
# small helpers
# ----------------------------------------------------------------------------
def _cdiv(a, b):
    return (a + b - 1) // b


def _round_up(x, m):
    return _cdiv(x, m) * m


def _sublane(compute_dtype):
    # sublane packing multiple for the given dtype (8 rows of 32-bit lanes)
    return max(8, 32 // jnp.dtype(compute_dtype).itemsize)


def _physical_vmem_bytes():
    try:
        return int(pltpu.get_tpu_info().vmem_capacity_bytes)
    except Exception:
        return 128 * 1024 * 1024            # v5e/v6e per-core VMEM fallback


def _choose_tile(L, target, sub):
    """L-tile: multiple of `sub`, close to `target`; L is padded to n_tiles*TL."""
    target = max(sub, min(_round_up(target, sub), _round_up(L, sub)))
    n = _cdiv(L, target)
    return _round_up(_cdiv(L, n), sub)


def _fused_vmem_bytes(TL, meta, K, in_item, out_item, comp_item):
    est = 2 * TL * meta[0]['cin_p'] * in_item            # double-buffered x tile
    est += 2 * TL * meta[-1]['cout_p'] * out_item        # double-buffered out tile
    for m in meta:
        est += 2 * K * (m['cin_p'] * m['n1'] + m['cout_p'] * m['cout_p']) * comp_item
        est += 2 * (m['n1'] + m['cout_p']) * 4            # biases (f32)
        est += (m['pad_align'] + TL) * (m['cin_p'] + m['cout_p']) * comp_item
        est += 6 * TL * max(m['n1'], m['cout_p']) * 4     # f32 temporaries
    return est


# ----------------------------------------------------------------------------
# Fused Pallas kernel: all TemporalBlocks, streamed over L tiles with
# per-layer causal halos carried in persistent VMEM scratch.
#   block_i: out = LeakyReLU( act(conv2(act(conv1(x)))) + residual(x) )
# ----------------------------------------------------------------------------
def _make_fused_kernel(meta, K, activation, TL, compute_dtype):
    n_layers = len(meta)

    def act(h):
        if activation == 'gelu':
            return jax.nn.gelu(h, approximate=False)      # nn.GELU default (erf)
        if activation == 'relu':
            return jnp.maximum(h, 0.0)
        return jnp.where(h >= 0, h, 0.01 * h)             # nn.LeakyReLU default

    def kernel(*refs):
        x_ref = refs[0]
        w_refs = refs[1:1 + 4 * n_layers]
        o_ref = refs[1 + 4 * n_layers]
        s_refs = refs[2 + 4 * n_layers:]
        l = pl.program_id(1)

        cur = x_ref[...]                                  # (TL, C0_pad), compute dtype
        for i, m in enumerate(meta):
            w1, b1, w2, b2 = w_refs[4 * i:4 * (i + 1)]
            xbuf, hbuf = s_refs[2 * i], s_refs[2 * i + 1]
            d, pad, pa, cp = m['dilation'], m['pad'], m['pad_align'], m['cout_p']

            # ---- causal-halo carry (sublane-aligned persistent scratch) ----
            if pad > 0:
                @pl.when(l == 0)
                def _():
                    xbuf[0:pa, :] = jnp.zeros((pa, xbuf.shape[1]), xbuf.dtype)
                    hbuf[0:pa, :] = jnp.zeros((pa, hbuf.shape[1]), hbuf.dtype)

                @pl.when(l > 0)
                def _():
                    # load-before-store; also correct when pad > TL (overlap)
                    x_tail = xbuf[pa + TL - pad:pa + TL, :]
                    h_tail = hbuf[pa + TL - pad:pa + TL, :]
                    xbuf[pa - pad:pa, :] = x_tail
                    hbuf[pa - pad:pa, :] = h_tail

            xbuf[pa:pa + TL, :] = cur                     # aligned full-tile store

            def conv(buf, w_ref, b_ref):
                # K accumulating MXU dots (no im2col concat); f32 accumulation.
                y = None
                for k in range(K):
                    s = pa - pad + k * d
                    p_ = jnp.dot(buf[s:s + TL, :], w_ref[k],
                                 preferred_element_type=jnp.float32)
                    y = p_ if y is None else y + p_
                return y + b_ref[...]

            # conv1 (+ fused 1x1 downsample columns) -> act -> dropout(=id)
            y1 = conv(xbuf, w1, b1)                       # (TL, n1) f32
            h1 = act(y1[:, :cp])
            res = y1[:, cp:2 * cp] if m['has_ds'] else cur.astype(jnp.float32)

            # conv2 -> act -> dropout(=id)
            hbuf[pa:pa + TL, :] = h1.astype(hbuf.dtype)
            h2 = act(conv(hbuf, w2, b2))

            z = h2 + res
            z = jnp.where(z >= 0, z, 0.01 * z)            # block-final LeakyReLU
            if i + 1 < n_layers:
                cur = z.astype(compute_dtype)
            else:
                o_ref[...] = z.astype(o_ref.dtype)

    return kernel


# ----------------------------------------------------------------------------
# Wrapper: builds grid / specs, pads channels+length, calls pallas_call once.
# ----------------------------------------------------------------------------
def tcn_forward(x_ncl, packed, *, kernel_size, activation, tile_l=512,
                compute_dtype=jnp.float32, out_dtype=jnp.float32):
    """TemporalConvNet forward (all blocks fused in one Pallas kernel).
    x_ncl: (B, C_in, L) PyTorch layout; returns (B, C_out_last, L)."""
    B, C_in, L = x_ncl.shape
    K = kernel_size
    sub = _sublane(compute_dtype)
    assert packed[0]['cin'] == C_in, (packed[0]['cin'], C_in)

    meta = []
    for i, q in enumerate(packed):
        d = 2 ** i
        pad = (K - 1) * d
        meta.append(dict(dilation=d, pad=pad,
                         pad_align=_round_up(pad, sub) if pad > 0 else 0,
                         has_ds=q['has_ds'], cin_p=q['cin_p'],
                         cout_p=q['cout_p'], n1=q['n1']))

    c0_p = packed[0]['cin_p']
    c_last, c_last_p = packed[-1]['cout'], packed[-1]['cout_p']
    in_item = jnp.dtype(compute_dtype).itemsize
    out_item = jnp.dtype(out_dtype).itemsize

    # ---- L tiling: TL multiple of the sublane pack; shrink until the fused
    #      working set fits the per-core VMEM budget ------------------------
    vmem_cap = int(0.70 * _physical_vmem_bytes())
    TL = _choose_tile(L, tile_l, sub)
    while TL > sub and _fused_vmem_bytes(TL, meta, K, in_item, out_item, in_item) > vmem_cap:
        TL = max(sub, _round_up(TL // 2, sub))
    n_tiles = _cdiv(L, TL)
    L_pad = n_tiles * TL
    est = _fused_vmem_bytes(TL, meta, K, in_item, out_item, in_item)
    vmem_limit = int(min(vmem_cap, max(32 * 1024 * 1024, int(1.5 * est))))

    # NCL -> NLC, zero-pad channels to the lane multiple and length to the
    # tile multiple (causal => trailing pad never leaks into valid rows),
    # cast activations to the compute dtype exactly once.
    x = jnp.transpose(x_ncl, (0, 2, 1))
    x = jnp.pad(x, ((0, 0), (0, L_pad - L), (0, c0_p - C_in))).astype(compute_dtype)

    in_specs = [pl.BlockSpec((None, TL, c0_p), lambda b, l: (b, l, 0))]
    inputs = [x]
    scratch_shapes = []
    for q, m in zip(packed, meta):
        w1 = q['w1'] if q['w1'].dtype == compute_dtype else q['w1'].astype(compute_dtype)
        w2 = q['w2'] if q['w2'].dtype == compute_dtype else q['w2'].astype(compute_dtype)
        in_specs += [
            pl.BlockSpec(w1.shape, lambda b, l: (0, 0, 0)),
            pl.BlockSpec(q['b1'].shape, lambda b, l: (0, 0)),
            pl.BlockSpec(w2.shape, lambda b, l: (0, 0, 0)),
            pl.BlockSpec(q['b2'].shape, lambda b, l: (0, 0)),
        ]
        inputs += [w1, q['b1'], w2, q['b2']]
        scratch_shapes += [
            pltpu.VMEM((m['pad_align'] + TL, m['cin_p']), compute_dtype),   # x halo
            pltpu.VMEM((m['pad_align'] + TL, m['cout_p']), compute_dtype),  # h1 halo
        ]

    kernel = _make_fused_kernel(meta, K, activation, TL, compute_dtype)

    out = pl.pallas_call(
        kernel,
        out_shape=jax.ShapeDtypeStruct((B, L_pad, c_last_p), out_dtype),
        grid=(B, n_tiles),
        in_specs=in_specs,
        out_specs=pl.BlockSpec((None, TL, c_last_p), lambda b, l: (b, l, 0)),
        scratch_shapes=scratch_shapes,
        compiler_params=pltpu.CompilerParams(
            dimension_semantics=("parallel", "arbitrary"),
            vmem_limit_bytes=vmem_limit),
    )(*inputs)

    out = out[:, :L, :c_last]                 # drop length / lane padding
    return jnp.transpose(out, (0, 2, 1))      # NLC -> NCL


# ----------------------------------------------------------------------------
# One-time parameter preprocessing (padding + downsample fusion) — JAX glue
# ----------------------------------------------------------------------------
def prepare_tcn_params(params, kernel_size, compute_dtype=jnp.float32):
    """Pack torch (Cout,Cin,K) conv weights into lane-padded kernel layout:
         w1: (K, Cin_pad, n1)  -- 1x1 downsample fused into the last
             (current-timestep) tap as columns [Cout_pad : 2*Cout_pad)
         w2: (K, Cout_pad, Cout_pad)
       Channels are zero-padded to multiples of 128; weights are cast to
       compute_dtype once; biases stay f32 (added after f32 accumulation)."""
    K = kernel_size
    packed = []
    for p in params:
        Cout, Cin, _ = p['w1'].shape
        cin_p, cout_p = _round_up(Cin, 128), _round_up(Cout, 128)
        has_ds = bool(p['has_ds'])
        n1 = 2 * cout_p if has_ds else cout_p

        w1 = jnp.zeros((K, cin_p, n1), jnp.float32)
        w1 = w1.at[:, :Cin, :Cout].set(jnp.transpose(p['w1'], (2, 1, 0)))
        b1 = jnp.zeros((1, n1), jnp.float32).at[0, :Cout].set(p['b1'])
        if has_ds:
            w1 = w1.at[K - 1, :Cin, cout_p:cout_p + Cout].set(jnp.transpose(p['wd']))
            b1 = b1.at[0, cout_p:cout_p + Cout].set(p['bd'])

        w2 = jnp.zeros((K, cout_p, cout_p), jnp.float32)
        w2 = w2.at[:, :Cout, :Cout].set(jnp.transpose(p['w2'], (2, 1, 0)))
        b2 = jnp.zeros((1, cout_p), jnp.float32).at[0, :Cout].set(p['b2'])

        packed.append(dict(
            w1=w1.astype(compute_dtype), b1=b1,
            w2=w2.astype(compute_dtype), b2=b2,
            has_ds=has_ds, cin=Cin, cout=Cout,
            cin_p=cin_p, cout_p=cout_p, n1=n1))
    return packed


# ----------------------------------------------------------------------------
# Parameter construction (deterministic, synthetic) — plain JAX glue
# ----------------------------------------------------------------------------
def _weight_norm_eff(v, g):
    # PyTorch weight_norm default dim=0: w = g * v / ||v||_{dims (1, 2)}
    norm = jnp.sqrt(jnp.sum(v * v, axis=(1, 2), keepdims=True))
    return g[:, None, None] * v / norm


def init_tcn_params(key, num_inputs, num_channels, kernel_size):
    params = []
    c_in = num_inputs
    for c_out in num_channels:
        key, *ks = jax.random.split(key, 10)
        v1 = 0.01 * jax.random.normal(ks[0], (c_out, c_in, kernel_size), jnp.float32)
        g1 = 0.5 + jax.random.uniform(ks[1], (c_out,), jnp.float32)
        b1 = 0.1 * jax.random.normal(ks[2], (c_out,), jnp.float32)
        v2 = 0.01 * jax.random.normal(ks[3], (c_out, c_out, kernel_size), jnp.float32)
        g2 = 0.5 + jax.random.uniform(ks[4], (c_out,), jnp.float32)
        b2 = 0.1 * jax.random.normal(ks[5], (c_out,), jnp.float32)
        has_ds = (c_in != c_out)
        if has_ds:
            wd = 0.01 * jax.random.normal(ks[6], (c_out, c_in), jnp.float32)
            bd = 0.1 * jax.random.normal(ks[7], (c_out,), jnp.float32)
        else:
            wd = None
            bd = None
        params.append(dict(
            w1=_weight_norm_eff(v1, g1), b1=b1,
            w2=_weight_norm_eff(v2, g2), b2=b2,
            wd=wd, bd=bd, has_ds=has_ds,
        ))
        c_in = c_out
    return params


# ----------------------------------------------------------------------------
# Pure-JAX (XLA) reference for validation
# ----------------------------------------------------------------------------
def _act_ref(h, activation):
    if activation == 'gelu':
        return jax.nn.gelu(h, approximate=False)
    elif activation == 'relu':
        return jnp.maximum(h, 0.0)
    return jnp.where(h >= 0, h, 0.01 * h)


def _causal_conv_ref(x_ncl, w, b, dilation):
    pad = (w.shape[-1] - 1) * dilation
    xp = jnp.pad(x_ncl, ((0, 0), (0, 0), (pad, 0)))
    y = jax.lax.conv_general_dilated(
        xp, w, window_strides=(1,), padding='VALID', rhs_dilation=(dilation,),
        dimension_numbers=('NCH', 'OIH', 'NCH'))
    return y + b[None, :, None]


def tcn_ref(x_ncl, params, *, kernel_size, activation):
    h = x_ncl
    for i, p in enumerate(params):
        d = 2 ** i
        out = _act_ref(_causal_conv_ref(h, p['w1'], p['b1'], d), activation)
        out = _act_ref(_causal_conv_ref(out, p['w2'], p['b2'], d), activation)
        if p['has_ds']:
            res = jax.lax.conv_general_dilated(
                h, p['wd'][:, :, None], (1,), 'VALID',
                dimension_numbers=('NCH', 'OIH', 'NCH')) + p['bd'][None, :, None]
        else:
            res = h
        z = out + res
        h = jnp.where(z >= 0, z, 0.01 * z)                # LeakyReLU
    return h


# ----------------------------------------------------------------------------
if __name__ == "__main__":
    B, C_IN, L, K = 2, 4, 16, 3
    key = jax.random.PRNGKey(0)

    cases = [
        # name, channels, activation, tile_l, compute_dtype, atol, rtol
        ("base (halo carry, downsample fusion)", (8, 8), 'relu',
         8, jnp.float32, 1e-4, 1e-4),
        ("deep dilations (pad > TL halo shift)", (8, 8, 8, 8), 'leaky',
         8, jnp.float32, 1e-4, 1e-4),
        ("bf16 compute smoke test", (8, 8), 'relu',
         16, jnp.bfloat16, 1e-1, 1e-1),
    ]

    for idx, (name, chans, activation, tile_l, cdt, atol, rtol) in enumerate(cases):
        k_x, k_p = jax.random.split(jax.random.fold_in(key, idx))
        x = jax.random.normal(k_x, (B, C_IN, L), jnp.float32)   # PyTorch NCL input
        params = init_tcn_params(k_p, C_IN, chans, K)
        packed = prepare_tcn_params(params, K, compute_dtype=cdt)

        out = tcn_forward(x, packed, kernel_size=K, activation=activation,
                          tile_l=tile_l, compute_dtype=cdt)
        out = jax.block_until_ready(out)

        ref = tcn_ref(x, params, kernel_size=K, activation=activation)
        assert out.shape == (B, chans[-1], L), (name, out.shape)
        err = float(jnp.max(jnp.abs(out - ref)))
        assert jnp.allclose(out, ref, atol=atol, rtol=rtol), (name, err)

    print("KERNEL_OK")
</pallas_src>

<mosaic_0001>
module attributes {stable_mosaic.version = 11 : i64} {
  func.func @kernel(%arg0: i32, %arg1: i32, %arg2: memref<1x8x128xf32, #tpu.memory_space<vmem>>, %arg3: memref<3x128x256xf32, #tpu.memory_space<vmem>>, %arg4: memref<1x256xf32, #tpu.memory_space<vmem>>, %arg5: memref<3x128x128xf32, #tpu.memory_space<vmem>>, %arg6: memref<1x128xf32, #tpu.memory_space<vmem>>, %arg7: memref<3x128x128xf32, #tpu.memory_space<vmem>>, %arg8: memref<1x128xf32, #tpu.memory_space<vmem>>, %arg9: memref<3x128x128xf32, #tpu.memory_space<vmem>>, %arg10: memref<1x128xf32, #tpu.memory_space<vmem>>, %arg11: memref<1x8x128xf32, #tpu.memory_space<vmem>>, %arg12: memref<16x128xf32, #tpu.memory_space<vmem>>, %arg13: memref<16x128xf32, #tpu.memory_space<vmem>>, %arg14: memref<16x128xf32, #tpu.memory_space<vmem>>, %arg15: memref<16x128xf32, #tpu.memory_space<vmem>>) attributes {dimension_semantics = [#tpu.dimension_semantics<parallel>, #tpu.dimension_semantics<arbitrary>], iteration_bounds = array<i64: 2, 2>, scalar_prefetch = 0 : i64, scratch_operands = 4 : i64, tpu.core_type = #tpu.core_type<tc>, window_params = [{transform_indices = @transform_0, window_bounds = array<i64: 1, 8, 128>}, {pipeline_mode = #tpu.pipeline_mode<synchronous>, transform_indices = @transform_1, window_bounds = array<i64: 3, 128, 256>}, {pipeline_mode = #tpu.pipeline_mode<synchronous>, transform_indices = @transform_2, window_bounds = array<i64: 1, 256>}, {pipeline_mode = #tpu.pipeline_mode<synchronous>, transform_indices = @transform_3, window_bounds = array<i64: 3, 128, 128>}, {pipeline_mode = #tpu.pipeline_mode<synchronous>, transform_indices = @transform_4, window_bounds = array<i64: 1, 128>}, {pipeline_mode = #tpu.pipeline_mode<synchronous>, transform_indices = @transform_5, window_bounds = array<i64: 3, 128, 128>}, {pipeline_mode = #tpu.pipeline_mode<synchronous>, transform_indices = @transform_6, window_bounds = array<i64: 1, 128>}, {pipeline_mode = #tpu.pipeline_mode<synchronous>, transform_indices = @transform_7, window_bounds = array<i64: 3, 128, 128>}, {pipeline_mode = #tpu.pipeline_mode<synchronous>, transform_indices = @transform_8, window_bounds = array<i64: 1, 128>}, {transform_indices = @transform_9, window_bounds = array<i64: 1, 8, 128>}]} {
    %c0 = arith.constant 0 : index
    %c0_0 = arith.constant 0 : index
    %c0_1 = arith.constant 0 : index
    %0 = vector.load %arg2[%c0, %c0_0, %c0_1] : memref<1x8x128xf32, #tpu.memory_space<vmem>>, vector<1x8x128xf32>
    %1 = vector.shape_cast %0 : vector<1x8x128xf32> to vector<8x128xf32>
    %c0_i32 = arith.constant 0 : i32
    %2 = arith.cmpi eq, %arg1, %c0_i32 : i32
    %3 = arith.extui %2 : i1 to i32
    %c0_i32_2 = arith.constant 0 : i32
    %4 = arith.cmpi ne, %3, %c0_i32_2 : i32
    scf.if %4 {
      %cst_101 = arith.constant 0.000000e+00 : f32
      %111 = vector.broadcast %cst_101 : f32 to vector<8x128xf32>
      %c0_102 = arith.constant 0 : index
      %c0_103 = arith.constant 0 : index
      %112 = vector.load %arg12[%c0_102, %c0_103] : memref<16x128xf32, #tpu.memory_space<vmem>>, vector<8x128xf32>
      tpu.vector_store %arg12[%c0_102, %c0_103], %111 {strides = array<i32>} : memref<16x128xf32, #tpu.memory_space<vmem>>, vector<8x128xf32>,
      %cst_104 = arith.constant 0.000000e+00 : f32
      %113 = vector.broadcast %cst_104 : f32 to vector<8x128xf32>
      %c0_105 = arith.constant 0 : index
      %c0_106 = arith.constant 0 : index
      %114 = vector.load %arg13[%c0_105, %c0_106] : memref<16x128xf32, #tpu.memory_space<vmem>>, vector<8x128xf32>
      tpu.vector_store %arg13[%c0_105, %c0_106], %113 {strides = array<i32>} : memref<16x128xf32, #tpu.memory_space<vmem>>, vector<8x128xf32>,
    } else {
    }
    %c0_i32_3 = arith.constant 0 : i32
    %5 = arith.cmpi sgt, %arg1, %c0_i32_3 : i32
    %6 = arith.extui %5 : i1 to i32
    %c0_i32_4 = arith.constant 0 : i32
    %7 = arith.cmpi ne, %6, %c0_i32_4 : i32
    scf.if %7 {
      %c14 = arith.constant 14 : index
      %c0_101 = arith.constant 0 : index
      %111 = vector.load %arg12[%c14, %c0_101] : memref<16x128xf32, #tpu.memory_space<vmem>>, vector<2x128xf32>
      %c14_102 = arith.constant 14 : index
      %c0_103 = arith.constant 0 : index
      %112 = vector.load %arg13[%c14_102, %c0_103] : memref<16x128xf32, #tpu.memory_space<vmem>>, vector<2x128xf32>
      %c6_104 = arith.constant 6 : index
      %c0_105 = arith.constant 0 : index
      %113 = vector.load %arg12[%c6_104, %c0_105] : memref<16x128xf32, #tpu.memory_space<vmem>>, vector<2x128xf32>
      tpu.vector_store %arg12[%c6_104, %c0_105], %111 {strides = array<i32>} : memref<16x128xf32, #tpu.memory_space<vmem>>, vector<2x128xf32>,
      %c6_106 = arith.constant 6 : index
      %c0_107 = arith.constant 0 : index
      %114 = vector.load %arg13[%c6_106, %c0_107] : memref<16x128xf32, #tpu.memory_space<vmem>>, vector<2x128xf32>
      tpu.vector_store %arg13[%c6_106, %c0_107], %112 {strides = array<i32>} : memref<16x128xf32, #tpu.memory_space<vmem>>, vector<2x128xf32>,
    } else {
    }
    %c8 = arith.constant 8 : index
    %c0_5 = arith.constant 0 : index
    %8 = vector.load %arg12[%c8, %c0_5] : memref<16x128xf32, #tpu.memory_space<vmem>>, vector<8x128xf32>
    tpu.vector_store %arg12[%c8, %c0_5], %1 {strides = array<i32>} : memref<16x128xf32, #tpu.memory_space<vmem>>, vector<8x128xf32>,
    %c6 = arith.constant 6 : index
    %c0_6 = arith.constant 0 : index
    %9 = vector.load %arg12[%c6, %c0_6] : memref<16x128xf32, #tpu.memory_space<vmem>>, vector<8x128xf32>
    %c0_7 = arith.constant 0 : index
    %c0_8 = arith.constant 0 : index
    %c0_9 = arith.constant 0 : index
    %10 = vector.load %arg3[%c0_7, %c0_8, %c0_9] : memref<3x128x256xf32, #tpu.memory_space<vmem>>, vector<1x128x256xf32>
    %11 = vector.shape_cast %10 : vector<1x128x256xf32> to vector<128x256xf32>
    %cst = arith.constant dense<0.000000e+00> : vector<8x256xf32>
    %12 = tpu.matmul %9, %11, %cst {dimension_numbers = #tpu.dot_dimension_numbers<[1], [0], [0], [1], [0, 0, 1, 1], [], []>} : vector<8x128xf32>, vector<128x256xf32>, vector<8x256xf32> -> vector<8x256xf32>
    %c7 = arith.constant 7 : index
    %c0_10 = arith.constant 0 : index
    %13 = vector.load %arg12[%c7, %c0_10] : memref<16x128xf32, #tpu.memory_space<vmem>>, vector<8x128xf32>
    %c1 = arith.constant 1 : index
    %c0_11 = arith.constant 0 : index
    %c0_12 = arith.constant 0 : index
    %14 = vector.load %arg3[%c1, %c0_11, %c0_12] : memref<3x128x256xf32, #tpu.memory_space<vmem>>, vector<1x128x256xf32>
    %15 = vector.shape_cast %14 : vector<1x128x256xf32> to vector<128x256xf32>
    %cst_13 = arith.constant dense<0.000000e+00> : vector<8x256xf32>
    %16 = tpu.matmul %13, %15, %cst_13 {dimension_numbers = #tpu.dot_dimension_numbers<[1], [0], [0], [1], [0, 0, 1, 1], [], []>} : vector<8x128xf32>, vector<128x256xf32>, vector<8x256xf32> -> vector<8x256xf32>
    %17 = arith.addf %12, %16 : vector<8x256xf32>
    %c8_14 = arith.constant 8 : index
    %c0_15 = arith.constant 0 : index
    %18 = vector.load %arg12[%c8_14, %c0_15] : memref<16x128xf32, #tpu.memory_space<vmem>>, vector<8x128xf32>
    %c2 = arith.constant 2 : index
    %c0_16 = arith.constant 0 : index
    %c0_17 = arith.constant 0 : index
    %19 = vector.load %arg3[%c2, %c0_16, %c0_17] : memref<3x128x256xf32, #tpu.memory_space<vmem>>, vector<1x128x256xf32>
    %20 = vector.shape_cast %19 : vector<1x128x256xf32> to vector<128x256xf32>
    %cst_18 = arith.constant dense<0.000000e+00> : vector<8x256xf32>
    %21 = tpu.matmul %18, %20, %cst_18 {dimension_numbers = #tpu.dot_dimension_numbers<[1], [0], [0], [1], [0, 0, 1, 1], [], []>} : vector<8x128xf32>, vector<128x256xf32>, vector<8x256xf32> -> vector<8x256xf32>
    %22 = arith.addf %17, %21 : vector<8x256xf32>
    %c0_19 = arith.constant 0 : index
    %c0_20 = arith.constant 0 : index
    %23 = vector.load %arg4[%c0_19, %c0_20] : memref<1x256xf32, #tpu.memory_space<vmem>>, vector<1x256xf32>
    %24 = vector.broadcast %23 : vector<1x256xf32> to vector<8x256xf32>
    %25 = arith.addf %22, %24 : vector<8x256xf32>
    %26 = vector.extract_strided_slice %25 {offsets = [0, 0], sizes = [8, 128], strides = [1, 1]} : vector<8x256xf32> to vector<8x128xf32>
    %cst_21 = arith.constant 0.000000e+00 : f32
    %27 = vector.broadcast %cst_21 : f32 to vector<8x128xf32>
    %28 = arith.maximumf %26, %27 : vector<8x128xf32>
    %29 = vector.extract_strided_slice %25 {offsets = [0, 128], sizes = [8, 128], strides = [1, 1]} : vector<8x256xf32> to vector<8x128xf32>
    %c8_22 = arith.constant 8 : index
    %c0_23 = arith.constant 0 : index
    %30 = vector.load %arg13[%c8_22, %c0_23] : memref<16x128xf32, #tpu.memory_space<vmem>>, vector<8x128xf32>
    tpu.vector_store %arg13[%c8_22, %c0_23], %28 {strides = array<i32>} : memref<16x128xf32, #tpu.memory_space<vmem>>, vector<8x128xf32>,
    %c6_24 = arith.constant 6 : index
    %c0_25 = arith.constant 0 : index
    %31 = vector.load %arg13[%c6_24, %c0_25] : memref<16x128xf32, #tpu.memory_space<vmem>>, vector<8x128xf32>
    %c0_26 = arith.constant 0 : index
    %c0_27 = arith.constant 0 : index
    %c0_28 = arith.constant 0 : index
    %32 = vector.load %arg5[%c0_26, %c0_27, %c0_28] : memref<3x128x128xf32, #tpu.memory_space<vmem>>, vector<1x128x128xf32>
    %33 = vector.shape_cast %32 : vector<1x128x128xf32> to vector<128x128xf32>
    %cst_29 = arith.constant dense<0.000000e+00> : vector<8x128xf32>
    %34 = tpu.matmul %31, %33, %cst_29 {dimension_numbers = #tpu.dot_dimension_numbers<[1], [0], [0], [1], [0, 0, 1, 1], [], []>} : vector<8x128xf32>, vector<128x128xf32>, vector<8x128xf32> -> vector<8x128xf32>
    %c7_30 = arith.constant 7 : index
    %c0_31 = arith.constant 0 : index
    %35 = vector.load %arg13[%c7_30, %c0_31] : memref<16x128xf32, #tpu.memory_space<vmem>>, vector<8x128xf32>
    %c1_32 = arith.constant 1 : index
    %c0_33 = arith.constant 0 : index
    %c0_34 = arith.constant 0 : index
    %36 = vector.load %arg5[%c1_32, %c0_33, %c0_34] : memref<3x128x128xf32, #tpu.memory_space<vmem>>, vector<1x128x128xf32>
    %37 = vector.shape_cast %36 : vector<1x128x128xf32> to vector<128x128xf32>
    %cst_35 = arith.constant dense<0.000000e+00> : vector<8x128xf32>
    %38 = tpu.matmul %35, %37, %cst_35 {dimension_numbers = #tpu.dot_dimension_numbers<[1], [0], [0], [1], [0, 0, 1, 1], [], []>} : vector<8x128xf32>, vector<128x128xf32>, vector<8x128xf32> -> vector<8x128xf32>
    %39 = arith.addf %34, %38 : vector<8x128xf32>
    %c8_36 = arith.constant 8 : index
    %c0_37 = arith.constant 0 : index
    %40 = vector.load %arg13[%c8_36, %c0_37] : memref<16x128xf32, #tpu.memory_space<vmem>>, vector<8x128xf32>
    %c2_38 = arith.constant 2 : index
    %c0_39 = arith.constant 0 : index
    %c0_40 = arith.constant 0 : index
    %41 = vector.load %arg5[%c2_38, %c0_39, %c0_40] : memref<3x128x128xf32, #tpu.memory_space<vmem>>, vector<1x128x128xf32>
    %42 = vector.shape_cast %41 : vector<1x128x128xf32> to vector<128x128xf32>
    %cst_41 = arith.constant dense<0.000000e+00> : vector<8x128xf32>
    %43 = tpu.matmul %40, %42, %cst_41 {dimension_numbers = #tpu.dot_dimension_numbers<[1], [0], [0], [1], [0, 0, 1, 1], [], []>} : vector<8x128xf32>, vector<128x128xf32>, vector<8x128xf32> -> vector<8x128xf32>
    %44 = arith.addf %39, %43 : vector<8x128xf32>
    %c0_42 = arith.constant 0 : index
    %c0_43 = arith.constant 0 : index
    %45 = vector.load %arg6[%c0_42, %c0_43] : memref<1x128xf32, #tpu.memory_space<vmem>>, vector<1x128xf32>
    %46 = vector.broadcast %45 : vector<1x128xf32> to vector<8x128xf32>
    %47 = arith.addf %44, %46 : vector<8x128xf32>
    %cst_44 = arith.constant 0.000000e+00 : f32
    %48 = vector.broadcast %cst_44 : f32 to vector<8x128xf32>
    %49 = arith.maximumf %47, %48 : vector<8x128xf32>
    %50 = arith.addf %49, %29 : vector<8x128xf32>
    %cst_45 = arith.constant 0.000000e+00 : f32
    %51 = vector.broadcast %cst_45 : f32 to vector<8x128xf32>
    %52 = arith.cmpf oge, %50, %51 : vector<8x128xf32>
    %cst_46 = arith.constant 0.00999999977 : f32
    %53 = vector.broadcast %cst_46 : f32 to vector<8x128xf32>
    %54 = arith.mulf %53, %50 : vector<8x128xf32>
    %55 = arith.select %52, %50, %54 : vector<8x128xi1>, vector<8x128xf32>
    %c0_i32_47 = arith.constant 0 : i32
    %56 = arith.cmpi eq, %arg1, %c0_i32_47 : i32
    %57 = arith.extui %56 : i1 to i32
    %c0_i32_48 = arith.constant 0 : i32
    %58 = arith.cmpi ne, %57, %c0_i32_48 : i32
    scf.if %58 {
      %cst_101 = arith.constant 0.000000e+00 : f32
      %111 = vector.broadcast %cst_101 : f32 to vector<8x128xf32>
      %c0_102 = arith.constant 0 : index
      %c0_103 = arith.constant 0 : index
      %112 = vector.load %arg14[%c0_102, %c0_103] : memref<16x128xf32, #tpu.memory_space<vmem>>, vector<8x128xf32>
      tpu.vector_store %arg14[%c0_102, %c0_103], %111 {strides = array<i32>} : memref<16x128xf32, #tpu.memory_space<vmem>>, vector<8x128xf32>,
      %cst_104 = arith.constant 0.000000e+00 : f32
      %113 = vector.broadcast %cst_104 : f32 to vector<8x128xf32>
      %c0_105 = arith.constant 0 : index
      %c0_106 = arith.constant 0 : index
      %114 = vector.load %arg15[%c0_105, %c0_106] : memref<16x128xf32, #tpu.memory_space<vmem>>, vector<8x128xf32>
      tpu.vector_store %arg15[%c0_105, %c0_106], %113 {strides = array<i32>} : memref<16x128xf32, #tpu.memory_space<vmem>>, vector<8x128xf32>,
    } else {
    }
    %c0_i32_49 = arith.constant 0 : i32
    %59 = arith.cmpi sgt, %arg1, %c0_i32_49 : i32
    %60 = arith.extui %59 : i1 to i32
    %c0_i32_50 = arith.constant 0 : i32
    %61 = arith.cmpi ne, %60, %c0_i32_50 : i32
    scf.if %61 {
      %c12 = arith.constant 12 : index
      %c0_101 = arith.constant 0 : index
      %111 = vector.load %arg14[%c12, %c0_101] : memref<16x128xf32, #tpu.memory_space<vmem>>, vector<4x128xf32>
      %c12_102 = arith.constant 12 : index
      %c0_103 = arith.constant 0 : index
      %112 = vector.load %arg15[%c12_102, %c0_103] : memref<16x128xf32, #tpu.memory_space<vmem>>, vector<4x128xf32>
      %c4_104 = arith.constant 4 : index
      %c0_105 = arith.constant 0 : index
      %113 = vector.load %arg14[%c4_104, %c0_105] : memref<16x128xf32, #tpu.memory_space<vmem>>, vector<4x128xf32>
      tpu.vector_store %arg14[%c4_104, %c0_105], %111 {strides = array<i32>} : memref<16x128xf32, #tpu.memory_space<vmem>>, vector<4x128xf32>,
      %c4_106 = arith.constant 4 : index
      %c0_107 = arith.constant 0 : index
      %114 = vector.load %arg15[%c4_106, %c0_107] : memref<16x128xf32, #tpu.memory_space<vmem>>, vector<4x128xf32>
      tpu.vector_store %arg15[%c4_106, %c0_107], %112 {strides = array<i32>} : memref<16x128xf32, #tpu.memory_space<vmem>>, vector<4x128xf32>,
    } else {
    }
    %c8_51 = arith.constant 8 : index
    %c0_52 = arith.constant 0 : index
    %62 = vector.load %arg14[%c8_51, %c0_52] : memref<16x128xf32, #tpu.memory_space<vmem>>, vector<8x128xf32>
    tpu.vector_store %arg14[%c8_51, %c0_52], %55 {strides = array<i32>} : memref<16x128xf32, #tpu.memory_space<vmem>>, vector<8x128xf32>,
    %c4 = arith.constant 4 : index
    %c0_53 = arith.constant 0 : index
    %63 = vector.load %arg14[%c4, %c0_53] : memref<16x128xf32, #tpu.memory_space<vmem>>, vector<8x128xf32>
    %c0_54 = arith.constant 0 : index
    %c0_55 = arith.constant 0 : index
    %c0_56 = arith.constant 0 : index
    %64 = vector.load %arg7[%c0_54, %c0_55, %c0_56] : memref<3x128x128xf32, #tpu.memory_space<vmem>>, vector<1x128x128xf32>
    %65 = vector.shape_cast %64 : vector<1x128x128xf32> to vector<128x128xf32>
    %cst_57 = arith.constant dense<0.000000e+00> : vector<8x128xf32>
    %66 = tpu.matmul %63, %65, %cst_57 {dimension_numbers = #tpu.dot_dimension_numbers<[1], [0], [0], [1], [0, 0, 1, 1], [], []>} : vector<8x128xf32>, vector<128x128xf32>, vector<8x128xf32> -> vector<8x128xf32>
    %c6_58 = arith.constant 6 : index
    %c0_59 = arith.constant 0 : index
    %67 = vector.load %arg14[%c6_58, %c0_59] : memref<16x128xf32, #tpu.memory_space<vmem>>, vector<8x128xf32>
    %c1_60 = arith.constant 1 : index
    %c0_61 = arith.constant 0 : index
    %c0_62 = arith.constant 0 : index
    %68 = vector.load %arg7[%c1_60, %c0_61, %c0_62] : memref<3x128x128xf32, #tpu.memory_space<vmem>>, vector<1x128x128xf32>
    %69 = vector.shape_cast %68 : vector<1x128x128xf32> to vector<128x128xf32>
    %cst_63 = arith.constant dense<0.000000e+00> : vector<8x128xf32>
    %70 = tpu.matmul %67, %69, %cst_63 {dimension_numbers = #tpu.dot_dimension_numbers<[1], [0], [0], [1], [0, 0, 1, 1], [], []>} : vector<8x128xf32>, vector<128x128xf32>, vector<8x128xf32> -> vector<8x128xf32>
    %71 = arith.addf %66, %70 : vector<8x128xf32>
    %c8_64 = arith.constant 8 : index
    %c0_65 = arith.constant 0 : index
    %72 = vector.load %arg14[%c8_64, %c0_65] : memref<16x128xf32, #tpu.memory_space<vmem>>, vector<8x128xf32>
    %c2_66 = arith.constant 2 : index
    %c0_67 = arith.constant 0 : index
    %c0_68 = arith.constant 0 : index
    %73 = vector.load %arg7[%c2_66, %c0_67, %c0_68] : memref<3x128x128xf32, #tpu.memory_space<vmem>>, vector<1x128x128xf32>
    %74 = vector.shape_cast %73 : vector<1x128x128xf32> to vector<128x128xf32>
    %cst_69 = arith.constant dense<0.000000e+00> : vector<8x128xf32>
    %75 = tpu.matmul %72, %74, %cst_69 {dimension_numbers = #tpu.dot_dimension_numbers<[1], [0], [0], [1], [0, 0, 1, 1], [], []>} : vector<8x128xf32>, vector<128x128xf32>, vector<8x128xf32> -> vector<8x128xf32>
    %76 = arith.addf %71, %75 : vector<8x128xf32>
    %c0_70 = arith.constant 0 : index
    %c0_71 = arith.constant 0 : index
    %77 = vector.load %arg8[%c0_70, %c0_71] : memref<1x128xf32, #tpu.memory_space<vmem>>, vector<1x128xf32>
    %78 = vector.broadcast %77 : vector<1x128xf32> to vector<8x128xf32>
    %79 = arith.addf %76, %78 : vector<8x128xf32>
    %cst_72 = arith.constant 0.000000e+00 : f32
    %80 = vector.broadcast %cst_72 : f32 to vector<8x128xf32>
    %81 = arith.maximumf %79, %80 : vector<8x128xf32>
    %c8_73 = arith.constant 8 : index
    %c0_74 = arith.constant 0 : index
    %82 = vector.load %arg15[%c8_73, %c0_74] : memref<16x128xf32, #tpu.memory_space<vmem>>, vector<8x128xf32>
    tpu.vector_store %arg15[%c8_73, %c0_74], %81 {strides = array<i32>} : memref<16x128xf32, #tpu.memory_space<vmem>>, vector<8x128xf32>,
    %c4_75 = arith.constant 4 : index
    %c0_76 = arith.constant 0 : index
    %83 = vector.load %arg15[%c4_75, %c0_76] : memref<16x128xf32, #tpu.memory_space<vmem>>, vector<8x128xf32>
    %c0_77 = arith.constant 0 : index
    %c0_78 = arith.constant 0 : index
    %c0_79 = arith.constant 0 : index
    %84 = vector.load %arg9[%c0_77, %c0_78, %c0_79] : memref<3x128x128xf32, #tpu.memory_space<vmem>>, vector<1x128x128xf32>
    %85 = vector.shape_cast %84 : vector<1x128x128xf32> to vector<128x128xf32>
    %cst_80 = arith.constant dense<0.000000e+00> : vector<8x128xf32>
    %86 = tpu.matmul %83, %85, %cst_80 {dimension_numbers = #tpu.dot_dimension_numbers<[1], [0], [0], [1], [0, 0, 1, 1], [], []>} : vector<8x128xf32>, vector<128x128xf32>, vector<8x128xf32> -> vector<8x128xf32>
    %c6_81 = arith.constant 6 : index
    %c0_82 = arith.constant 0 : index
    %87 = vector.load %arg15[%c6_81, %c0_82] : memref<16x128xf32, #tpu.memory_space<vmem>>, vector<8x128xf32>
    %c1_83 = arith.constant 1 : index
    %c0_84 = arith.constant 0 : index
    %c0_85 = arith.constant 0 : index
    %88 = vector.load %arg9[%c1_83, %c0_84, %c0_85] : memref<3x128x128xf32, #tpu.memory_space<vmem>>, vector<1x128x128xf32>
    %89 = vector.shape_cast %88 : vector<1x128x128xf32> to vector<128x128xf32>
    %cst_86 = arith.constant dense<0.000000e+00> : vector<8x128xf32>
    %90 = tpu.matmul %87, %89, %cst_86 {dimension_numbers = #tpu.dot_dimension_numbers<[1], [0], [0], [1], [0, 0, 1, 1], [], []>} : vector<8x128xf32>, vector<128x128xf32>, vector<8x128xf32> -> vector<8x128xf32>
    %91 = arith.addf %86, %90 : vector<8x128xf32>
    %c8_87 = arith.constant 8 : index
    %c0_88 = arith.constant 0 : index
    %92 = vector.load %arg15[%c8_87, %c0_88] : memref<16x128xf32, #tpu.memory_space<vmem>>, vector<8x128xf32>
    %c2_89 = arith.constant 2 : index
    %c0_90 = arith.constant 0 : index
    %c0_91 = arith.constant 0 : index
    %93 = vector.load %arg9[%c2_89, %c0_90, %c0_91] : memref<3x128x128xf32, #tpu.memory_space<vmem>>, vector<1x128x128xf32>
    %94 = vector.shape_cast %93 : vector<1x128x128xf32> to vector<128x128xf32>
    %cst_92 = arith.constant dense<0.000000e+00> : vector<8x128xf32>
    %95 = tpu.matmul %92, %94, %cst_92 {dimension_numbers = #tpu.dot_dimension_numbers<[1], [0], [0], [1], [0, 0, 1, 1], [], []>} : vector<8x128xf32>, vector<128x128xf32>, vector<8x128xf32> -> vector<8x128xf32>
    %96 = arith.addf %91, %95 : vector<8x128xf32>
    %c0_93 = arith.constant 0 : index
    %c0_94 = arith.constant 0 : index
    %97 = vector.load %arg10[%c0_93, %c0_94] : memref<1x128xf32, #tpu.memory_space<vmem>>, vector<1x128xf32>
    %98 = vector.broadcast %97 : vector<1x128xf32> to vector<8x128xf32>
    %99 = arith.addf %96, %98 : vector<8x128xf32>
    %cst_95 = arith.constant 0.000000e+00 : f32
    %100 = vector.broadcast %cst_95 : f32 to vector<8x128xf32>
    %101 = arith.maximumf %99, %100 : vector<8x128xf32>
    %102 = arith.addf %101, %55 : vector<8x128xf32>
    %cst_96 = arith.constant 0.000000e+00 : f32
    %103 = vector.broadcast %cst_96 : f32 to vector<8x128xf32>
    %104 = arith.cmpf oge, %102, %103 : vector<8x128xf32>
    %cst_97 = arith.constant 0.00999999977 : f32
    %105 = vector.broadcast %cst_97 : f32 to vector<8x128xf32>
    %106 = arith.mulf %105, %102 : vector<8x128xf32>
    %107 = arith.select %104, %102, %106 : vector<8x128xi1>, vector<8x128xf32>
    %c0_98 = arith.constant 0 : index
    %c0_99 = arith.constant 0 : index
    %c0_100 = arith.constant 0 : index
    %108 = vector.load %arg11[%c0_98, %c0_99, %c0_100] : memref<1x8x128xf32, #tpu.memory_space<vmem>>, vector<1x8x128xf32>
    %109 = vector.shape_cast %108 : vector<1x8x128xf32> to vector<8x128xf32>
    %110 = vector.shape_cast %107 : vector<8x128xf32> to vector<1x8x128xf32>
    tpu.vector_store %arg11[%c0_98, %c0_99, %c0_100], %110 {strides = array<i32>} : memref<1x8x128xf32, #tpu.memory_space<vmem>>, vector<1x8x128xf32>,
    return
  }
  func.func @transform_0(%arg0: i32, %arg1: i32) -> (i32, i32, i32) {
    %c0_i32 = arith.constant 0 : i32
    %c0_i32_0 = arith.constant 0 : i32
    return %arg0, %arg1, %c0_i32 : i32, i32, i32
  }
  func.func @transform_1(%arg0: i32, %arg1: i32) -> (i32, i32, i32) {
    %c0_i32 = arith.constant 0 : i32
    %c0_i32_0 = arith.constant 0 : i32
    %c0_i32_1 = arith.constant 0 : i32
    %c0_i32_2 = arith.constant 0 : i32
    return %c0_i32, %c0_i32_0, %c0_i32_1 : i32, i32, i32
  }
  func.func @transform_2(%arg0: i32, %arg1: i32) -> (i32, i32) {
    %c0_i32 = arith.constant 0 : i32
    %c0_i32_0 = arith.constant 0 : i32
    %c0_i32_1 = arith.constant 0 : i32
    return %c0_i32, %c0_i32_0 : i32, i32
  }
  func.func @transform_3(%arg0: i32, %arg1: i32) -> (i32, i32, i32) {
    %c0_i32 = arith.constant 0 : i32
    %c0_i32_0 = arith.constant 0 : i32
    %c0_i32_1 = arith.constant 0 : i32
    %c0_i32_2 = arith.constant 0 : i32
    return %c0_i32, %c0_i32_0, %c0_i32_1 : i32, i32, i32
  }
  func.func @transform_4(%arg0: i32, %arg1: i32) -> (i32, i32) {
    %c0_i32 = arith.constant 0 : i32
    %c0_i32_0 = arith.constant 0 : i32
    %c0_i32_1 = arith.constant 0 : i32
    return %c0_i32, %c0_i32_0 : i32, i32
  }
  func.func @transform_5(%arg0: i32, %arg1: i32) -> (i32, i32, i32) {
    %c0_i32 = arith.constant 0 : i32
    %c0_i32_0 = arith.constant 0 : i32
    %c0_i32_1 = arith.constant 0 : i32
    %c0_i32_2 = arith.constant 0 : i32
    return %c0_i32, %c0_i32_0, %c0_i32_1 : i32, i32, i32
  }
  func.func @transform_6(%arg0: i32, %arg1: i32) -> (i32, i32) {
    %c0_i32 = arith.constant 0 : i32
    %c0_i32_0 = arith.constant 0 : i32
    %c0_i32_1 = arith.constant 0 : i32
    return %c0_i32, %c0_i32_0 : i32, i32
  }
  func.func @transform_7(%arg0: i32, %arg1: i32) -> (i32, i32, i32) {
    %c0_i32 = arith.constant 0 : i32
    %c0_i32_0 = arith.constant 0 : i32
    %c0_i32_1 = arith.constant 0 : i32
    %c0_i32_2 = arith.constant 0 : i32
    return %c0_i32, %c0_i32_0, %c0_i32_1 : i32, i32, i32
  }
  func.func @transform_8(%arg0: i32, %arg1: i32) -> (i32, i32) {
    %c0_i32 = arith.constant 0 : i32
    %c0_i32_0 = arith.constant 0 : i32
    %c0_i32_1 = arith.constant 0 : i32
    return %c0_i32, %c0_i32_0 : i32, i32
  }
  func.func @transform_9(%arg0: i32, %arg1: i32) -> (i32, i32, i32) {
    %c0_i32 = arith.constant 0 : i32
    %c0_i32_0 = arith.constant 0 : i32
    return %arg0, %arg1, %c0_i32 : i32, i32, i32
  }
}

</mosaic_0001>

<bundles_post_ra>
// kernel: tpu_custom_call.1
= control target key start
LH: loop header
LB: loop body
LE: loop exit
PB: predicated region body
PF: predicated region fallthrough
CT: control target
= control target key end

     0   :  { %s3107_s0 = inlined_call_operand.hbm [shape: f32[2,16,128], index: 0, kind: input, shape index: {}]   ;;  %s3108_s1 = inlined_call_operand.hbm [shape: f32[3,128,256], index: 1, kind: input, shape index: {}]   ;;  %s3109_s2 = inlined_call_operand.vmem [shape: f32[1,256], index: 2, kind: input, shape index: {}]   ;;  %s3110_s3 = inlined_call_operand.hbm [shape: f32[3,128,128], index: 3, kind: input, shape index: {}]   ;;  %s3111_s4 = inlined_call_operand.vmem [shape: f32[1,128], index: 4, kind: input, shape index: {}]   ;;  %s3112_s5 = inlined_call_operand.hbm [shape: f32[3,128,128], index: 5, kind: input, shape index: {}]   ;;  %s3113_s6 = inlined_call_operand.vmem [shape: f32[1,128], index: 6, kind: input, shape index: {}]   ;;  %s3114_s7 = inlined_call_operand.hbm [shape: f32[3,128,128], index: 7, kind: input, shape index: {}]   ;;  %s3115_s8 = inlined_call_operand.vmem [shape: f32[1,128], index: 8, kind: input, shape index: {}]   ;;  %s3116_s9 = inlined_call_operand.hbm [shape: f32[2,16,128], index: 9, kind: output, shape index: {}]  }
   0x1   :  { %3124 = sst [smem:[#allocation24_spill]] %s3108_s1 }
   0x2   :  { %3125 = sst [smem:[#allocation25_spill]] %s3110_s3 }
   0x3   :  { %3126 = sst [smem:[#allocation26_spill]] %s3112_s5 }
   0x4   :  { %3127 = sst [smem:[#allocation27_spill]] %s3114_s7 }
   0x5   :  { %3128 = sst [smem:[#allocation28_spill]] %s3116_s9 }
   0x6   :  { %14 = vsyncpa [#allocation7], 0 }
   0x7   :  { %16 = vsyncpa [#allocation7 + $0x1], 0 }
   0x8   :  { %17 = vsyncpa [#allocation10], 0 }
   0x9   :  { %18 = vsyncpa [#allocation13], 0 }
   0xa   :  { %19 = vsyncpa [#allocation8], 0 }
   0xb   :  { %21 = vsyncpa [#allocation8 + $0x1], 0  ;;  %s2680_s30 = smov 0   ;;  %s2682_s10 = smov 0  }
   0xc   :  { %s2684_s11 = smov 0   ;;  %s2686_s12 = smov 0  }
   0xd   :  { %s2688_s13 = smov 0   ;;  %s2690_s14 = smov 0  }
   0xe   :  { %s2692_s15 = smov 0   ;;  %s2694_s16 = smov 0  }
   0xf LB: > { %3129 = sst [smem:[#allocation20_spill]] %s2586_s30  ;;  %s3117_s17 = sadd.s32 4294967295, %s2614_s16   ;;  %s2614_s16 = sphi %s2694_s16, %s27_s16   ;;  %s2610_s15 = sphi %s2692_s15, %s3152_s15   ;;  %s2606_s14 = sphi %s2690_s14, %s3157_s14   ;;  %s2602_s13 = sphi %s2688_s13, %s3150_s13   ;;  %s2598_s12 = sphi %s2686_s12, %s3156_s12   ;;  %s2594_s11 = sphi %s2684_s11, %s3155_s11   ;;  %s2590_s10 = sphi %s2682_s10, %s3154_s10   ;;  %s2586_s30 = sphi %s2680_s30, %s3153_s30  }
  0x10   : > { %3130 = sst [smem:[#allocation21_spill]] %s2610_s15  ;;  %p1755_p0 = scmp.ge.s32.totalorder %s2614_s16, 1 }
  0x11   : > { %p2724_p1 = scmp.eq.s32.totalorder %s3117_s17, 0  ;;  %p268_p2 = scmp.lt.s32.totalorder %s2614_s16, 5 }
  0x12   : > { %s2616_s20 = smov [#allocation9]   ;;  %s2617_s23 = smov [#allocation12]  }
  0x13   : > { %p2729_p3 = pnand %p1755_p0, %p268_p2  ;;  %s280_s21 = sshll.u32 %s2616_s20, 4  ;;  %s281_s21 = int_to_ptr.vmem [resolvable:$true] %s280_s21 }
  0x14   : > { %s312_s24 = sshll.u32 %s2617_s23, 4  ;;  %s2389_s25 = scalar_lea.vmem %s281_s21, 12288  ;;  %s313_s24 = int_to_ptr.vmem [resolvable:$true] %s312_s24 }
  0x15   : > { %p2271_p4 = pneg %p2729_p3  ;;  %p2390_p7 = scmp.ne.s32.totalorder %s281_s21, %s2389_s25 }
  0x16   : > { %p2397_p10 = scmp.lt.s32.totalorder %s281_s21, %s281_s21  ;;  %p2398_p11 = scmp.lt.s32.totalorder %s2389_s25, %s2389_s25 }
  0x17   : > { %p2737_p5 = pnand %p2271_p4, %p2724_p1 }
  0x18   : > { %p2399_p12 = por %p2398_p11, %p2397_p10 }
  0x19   : > { %p2380_p6 = pneg %p2737_p5 }
  0x1b   : > { %p2392_p8 = pnand %p2390_p7, %p2380_p6 }
  0x1d   : > { %p2393_p9 = pneg %p2392_p8 }
  0x1f   : > { %p2400_p13 = pnand %p2399_p12, %p2393_p9 }
  0x21   : > { %2403 = shalt.err (!%p2400_p13)
}
  0x22   : > { %s2618_s26 = smov 256   ;;  %s2619_s27 = smov 16  }
  0x23   : > { %s3134_s1 = sld [smem:[#allocation24_spill]]  ;;  %s2620_s20 = smov [#allocation11]  }
  0x24   : > { %s296_s23 = sshll.u32 %s2620_s20, 4  ;;  %s2415_s17 = scalar_lea.vmem %s313_s24, 6144  ;;  %s297_s23 = int_to_ptr.vmem [resolvable:$true] %s296_s23 }
  0x25   : > { %p2416_p0 = scmp.ne.s32.totalorder %s313_s24, %s2415_s17  ;;  %p2423_p7 = scmp.lt.s32.totalorder %s313_s24, %s313_s24 }
  0x26   : > { %p2424_p8 = scmp.lt.s32.totalorder %s2415_s17, %s2415_s17 }
  0x27   : > { %p2418_p2 = pnand %p2416_p0, %p2380_p6 }
  0x28   : > { %p2425_p9 = por %p2424_p8, %p2423_p7 }
  0x29   : > { %2274 = dma.hbm_to_vmem [thread:$0]  (!%p2737_p5), %s3134_s1, 12288, %s281_s21, [#allocation10], %s2618_s26, %s2618_s26, %s2619_s27  }
  0x2a   : > { %p2419_p4 = pneg %p2418_p2 }
  0x2c   : > { %p2426_p10 = pnand %p2425_p9, %p2419_p4 }
  0x2e   : > { %2429 = shalt.err (!%p2426_p10)
}
  0x2f   : > { %s2621_s25 = smov 128   ;;  %s2622_s9 = smov 8  }
  0x30   : > { %s3135_s5 = sld [smem:[#allocation26_spill]]  ;;  %s2441_s27 = scalar_lea.vmem %s297_s23, 6144 }
  0x31   : > { %p2442_p11 = scmp.ne.s32.totalorder %s297_s23, %s2441_s27  ;;  %p2449_p0 = scmp.lt.s32.totalorder %s297_s23, %s297_s23 }
  0x32   : > { %p2450_p2 = scmp.lt.s32.totalorder %s2441_s27, %s2441_s27 }
  0x33   : > { %p2444_p12 = pnand %p2442_p11, %p2380_p6 }
  0x34   : > { %p2451_p4 = por %p2450_p2, %p2449_p0 }
  0x35   : > { %p2445_p13 = pneg %p2444_p12 }
  0x36   : > { %2280 = dma.hbm_to_vmem [thread:$0]  (!%p2737_p5), %s3135_s5, 6144, %s313_s24, [#allocation13], %s2621_s25, %s2621_s25, %s2622_s9  }
  0x37   : > { %p2452_p7 = pnand %p2451_p4, %p2445_p13 }
  0x39   : > { %2455 = shalt.err (!%p2452_p7)
}
  0x3a   : > { %s3136_s3 = sld [smem:[#allocation25_spill]]  ;;  %s2623_s24 = smov [#allocation14]  }
  0x3b   : > { %s328_s29 = sshll.u32 %s2623_s24, 4  ;;  %s329_s29 = int_to_ptr.vmem [resolvable:$true] %s328_s29 }
  0x3c   : > { %s2467_s20 = scalar_lea.vmem %s329_s29, 6144  ;;  %p2475_p11 = scmp.lt.s32.totalorder %s329_s29, %s329_s29 }
  0x3d   : > { %p2468_p8 = scmp.ne.s32.totalorder %s329_s29, %s2467_s20  ;;  %p2476_p12 = scmp.lt.s32.totalorder %s2467_s20, %s2467_s20 }
  0x3f   : > { %p2470_p9 = pnand %p2468_p8, %p2380_p6  ;;  %p2477_p13 = por %p2476_p12, %p2475_p11 }
  0x40   : > { %2277 = dma.hbm_to_vmem [thread:$0]  (!%p2737_p5), %s3136_s3, 6144, %s297_s23, [#allocation10], %s2621_s25, %s2621_s25, %s2622_s9  }
  0x41   : > { %p2471_p10 = pneg %p2470_p9 }
  0x43   : > { %p2478_p0 = pnand %p2477_p13, %p2471_p10 }
  0x45   : > { %2481 = shalt.err (!%p2478_p0)
}
  0x46   : > { %s3137_s7 = sld [smem:[#allocation27_spill]]  ;;  %s36_s23 = sadd.s32 1, %s2606_s14 }
  0x47   : > { %p37_p6 = scmp.ge.s32.totalorder %s36_s23, 2  ;;  %s39_s22 = sadd.s32 1, %s2610_s15 }
  0x48   : > { %s1754_s27 = sadd.s32 4294967294, %s2614_s16   ;;  %s48_s17 = sadd.s32 1, %s2594_s11 }
  0x49   : > { %s3159_s23 = smov (%p37_p6, %s36_s23), 0  ;;  %s3161_s22 = smov (!%p37_p6, %s39_s22), %s2610_s15 }
  0x4a   : > { %3138 = sst [smem:[#allocation22_spill]] %s3159_s23  ;;  %s44_s28 = ssub.s32 %s2606_s14, %s3159_s23 }
  0x4b   : > { %p55_p2 = scmp.ne.s32.totalorder %s2594_s11, %s2590_s10  ;;  %p41_p4 = scmp.ge.s32.totalorder %s3161_s22, 2 }
  0x4c   : > { %2283 = dma.hbm_to_vmem [thread:$0]  (!%p2737_p5), %s3137_s7, 6144, %s329_s29, [#allocation13], %s2621_s25, %s2621_s25, %s2622_s9  }
  0x4d   : > { %p61_p7 = scmp.ne.s32.totalorder %s2590_s10, %s2586_s30  ;;  %p56_p8 = scmp.eq.s32.totalorder %s2614_s16, 0 }
  0x4e   : > { %s3139_s9 = sadd.s32 4294967295, %s2614_s16   ;;  %s3163_s22 = smov (%p41_p4, %s3161_s22), 0 }
  0x4f   : > { %p255_p5 = scmp.eq.s32.totalorder %s3139_s9, 3  ;;  %3140 = sst [smem:[#allocation23_spill]] %s3163_s22 }
  0x50   : > { %p2795_p9 = por %p2724_p1, %p61_p7  ;;  %s43_s29 = ssub.s32 %s2610_s15, %s3163_s22 }
  0x51   : > { %p2799_p10 = por %p255_p5, %p55_p2  ;;  %p261_p11 = scmp.eq.s32.totalorder %s1754_s27, 3 }
  0x52   : > { %s45_s20 = sor.u32 %s44_s28, %s43_s29  ;;  %p2805_p12 = por %p56_p8, %p55_p2 }
  0x53   : > { %s3142_s24 = scalar_select %p2799_p10, 1, 0 }
  0x54   : > { %p46_p13 = scmp.eq.s32.totalorder %s45_s20, 0  ;;  %p2809_p0 = por %p261_p11, %p61_p7 }
  0x55   : > { %s345_s9 = sand.u32 1, %s2594_s11   ;;  %s1762_s1 = sshll.u32 %s2610_s15, 1 }
  0x56   : > { %s3144_s26 = scalar_select %p2809_p0, 1, 0 }
  0x57   : > { %s2816_s3 = scalar_select %p46_p13, %s2594_s11, %s48_s17  }
  0x58   : > { %p2296_p6 = scmp.lt.s32.totalorder %s2614_s16, 4  ;;  %s1761_s5 = sshll.u32 %s345_s9, 3 }
  0x59   : > { %s354_s7 = sadd.s32 %s2606_s14, %s1762_s1  ;;  %s349_s27 = scalar_lea.vmem [#allocation6], %s1761_s5 }
  0x5a   : > { %s1763_s22 = sshll.u32 %s354_s7, 7  ;;  %s358_s28 = sshll.u32 %s349_s27, 4  ;;  %s359_s28 = int_to_ptr.vmem [resolvable:$true] %s358_s28 }
  0x5b   : > { %s356_s30 = scalar_lea.hbm %s3107_s0, %s1763_s22  ;;  %p2825_p2 = pnand %p2296_p6, %p2805_p12 }
  0x5c   : > { %s346_s15 = scalar_lea.sflag [#allocation7], %s345_s9  ;;  %s2495_s17 = scalar_lea.vmem %s359_s28, 128 }
  0x5d   : > { %p2484_p4 = pneg %p2825_p2  ;;  %p2496_p7 = scmp.ne.s32.totalorder %s359_s28, %s2495_s17 }
  0x5e   : > { %s2624_s1 = smov [#allocation6]  }
  0x5f   : > { %p2498_p8 = pnand %p2496_p7, %p2484_p4  ;;  %s2500_s5 = sshll.u32 %s2624_s1, 4  ;;  %s2501_s5 = int_to_ptr.vmem [resolvable:$false] %s2500_s5 }
  0x60   : > { %s2502_s7 = scalar_lea.vmem %s2501_s5, 256  ;;  %p2503_p11 = scmp.lt.s32.totalorder %s359_s28, %s2501_s5 }
  0x61   : > { %p2499_p5 = pneg %p2498_p8  ;;  %p2504_p13 = scmp.lt.s32.totalorder %s2502_s7, %s2495_s17 }
  0x63   : > { %p2505_p0 = por %p2504_p13, %p2503_p11 }
  0x65   : > { %p2506_p10 = pnand %p2505_p0, %p2499_p5 }
  0x67   : > { %2509 = shalt.err (!%p2506_p10)
}
  0x68   : > { %2287 = dma.hbm_to_vmem [thread:$0]  (!%p2825_p2), %s356_s30, 128, %s359_s28, %s346_s15  }
  0x69   : > { %367 = sbr.rel (%p2729_p3) target bundleno = 1173 (0x495), region = 56  ;;  %s2836_s23 = sand.u32 (!%p2729_p3), 1, %s2590_s10  }
  0x6a   : > { %s1765_s22 = sshll.u32 (!%p2729_p3), %s2836_s23, 3  ;;  %s370_s21 = scalar_lea.sflag (!%p2729_p3), [#allocation7], %s2836_s23 }
  0x6b   : > { %s373_s9 = scalar_lea.vmem (!%p2729_p3), [#allocation6], %s1765_s22 }
  0x6e   : > { %2569 = dma.done.wait (%p2795_p9), %s370_s21, 128  }
  0x6f   : > { %2571 = vsyncadd (%p2795_p9), %s370_s21, 4294967168 }
  0x70   : > { %2573 = dma.done.wait (%p2724_p1), [#allocation10], 18432  }
  0x71   : > { %2575 = vsyncadd (%p2724_p1), [#allocation10], 4294948864 }
  0x72   : > { %2577 = dma.done.wait (%p2724_p1), [#allocation13], 12288  }
  0x73   : > { %2579 = vsyncadd (%p2724_p1), [#allocation13], 4294955008  ;;  %v2852_v0 = vld [vmem:[%s373_s9] sm:$0xff]  ;;  %s2854_s30 = scalar_lea.vmem [#allocation15], %s1765_s22  ;;  %p1771_p3 = scmp.ne.s32.totalorder %s2598_s12, 0 }
  0x75   : > { %428 = sbr.rel (%p1771_p3) target bundleno = 124 (0x7c), region = 80 }
  0x7a   : > { %v2625_v1 = vmov 0.0  }
  0x7b   : > { %429 = vst [vmem:[#allocation2] sm:$0xff] %v2625_v1  ;;  %430 = vst [vmem:[#allocation3] sm:$0xff] %v2625_v1 }
  0x7c PF: > { %p1772_p9 = scmp.le.s32.totalorder %s2598_s12, 0 }
  0x7e   : > { %434 = sbr.rel (%p1772_p9) target bundleno = 133 (0x85), region = 84 }
  0x83   : > { %v435_v2 = vld [vmem:[#allocation2 + $0xe] sm:$0x3]  ;;  %v436_v3 = vld [vmem:[#allocation3 + $0xe] sm:$0x3] }
  0x84   : > { %437 = vst [vmem:[#allocation2 + $0x6] sm:$0x3] %v435_v2  ;;  %438 = vst [vmem:[#allocation3 + $0x6] sm:$0x3] %v436_v3 }
  0x85 PF: > { %v506_v4 = vld [vmem:[#allocation9 + $0x1f8] sm:$0xff]  ;;  %v505_v6 = vld [vmem:[#allocation9 + $0x1f0] sm:$0xff]  ;;  %439 = vst [vmem:[#allocation2 + $0x8] sm:$0xff] %v2852_v0  ;;  %v504_v8 = vld [vmem:[#allocation9 + $0x1e8] sm:$0xff]  ;;  %vm2627_vm0 = vmmov 0  }
  0x86   : > { %v472_v5 = vld [vmem:[#allocation9 + $0xf8] sm:$0xff]  ;;  %507 = vmatprep.subr.mxu0 %v506_v4  ;;  %v471_v7 = vld [vmem:[#allocation9 + $0xf0] sm:$0xff]  ;;  %v470_v9 = vld [vmem:[#allocation9 + $0xe8] sm:$0xff] }
  0x87   : > { %578 = vmatprep.subr.mxu1 %v472_v5  ;;  %508 = vmatpush1.msra.mxu0 %v505_v6  ;;  %v503_v10 = vld [vmem:[#allocation9 + $0x1e0] sm:$0xff]  ;;  %v502_v12 = vld [vmem:[#allocation9 + $0x1d8] sm:$0xff]  ;;  %v501_v14 = vld [vmem:[#allocation9 + $0x1d0] sm:$0xff] }
  0x88   : > { %579 = vmatpush1.msra.mxu1 %v471_v7  ;;  %v469_v11 = vld [vmem:[#allocation9 + $0xe0] sm:$0xff]  ;;  %509 = vmatprep.subr.mxu0 %v504_v8  ;;  %v468_v13 = vld [vmem:[#allocation9 + $0xd8] sm:$0xff]  ;;  %v467_v15 = vld [vmem:[#allocation9 + $0xd0] sm:$0xff]  ;;  %v2626_v7 = vmov 0.0  }
  0x89   : > { %580 = vmatprep.subr.mxu1 %v470_v9  ;;  %510 = vmatpush1.msra.mxu0 %v503_v10  ;;  %v500_v16 = vld [vmem:[#allocation9 + $0x1c8] sm:$0xff]  ;;  %v499_v18 = vld [vmem:[#allocation9 + $0x1c0] sm:$0xff]  ;;  %v498_v20 = vld [vmem:[#allocation9 + $0x1b8] sm:$0xff] }
  0x8a   : > { %581 = vmatpush1.msra.mxu1 %v469_v11  ;;  %v466_v17 = vld [vmem:[#allocation9 + $0xc8] sm:$0xff]  ;;  %511 = vmatprep.subr.mxu0 %v502_v12  ;;  %v465_v19 = vld [vmem:[#allocation9 + $0xc0] sm:$0xff]  ;;  %v464_v21 = vld [vmem:[#allocation9 + $0xb8] sm:$0xff] }
  0x8b   : > { %582 = vmatprep.subr.mxu1 %v468_v13  ;;  %512 = vmatpush1.msra.mxu0 %v501_v14  ;;  %v497_v22 = vld [vmem:[#allocation9 + $0x1b0] sm:$0xff]  ;;  %v496_v24 = vld [vmem:[#allocation9 + $0x1a8] sm:$0xff]  ;;  %v495_v26 = vld [vmem:[#allocation9 + $0x1a0] sm:$0xff] }
  0x8c   : > { %583 = vmatpush1.msra.mxu1 %v467_v15  ;;  %513 = vmatprep.subr.mxu0 %v500_v16  ;;  %v463_v23 = vld [vmem:[#allocation9 + $0xb0] sm:$0xff]  ;;  %v462_v25 = vld [vmem:[#allocation9 + $0xa8] sm:$0xff]  ;;  %v461_v27 = vld [vmem:[#allocation9 + $0xa0] sm:$0xff] }
  0x8d   : > { %584 = vmatprep.subr.mxu1 %v466_v17  ;;  %514 = vmatpush1.msra.mxu0 %v499_v18  ;;  %v494_v28 = vld [vmem:[#allocation9 + $0x198] sm:$0xff]  ;;  %v493_v30 = vld [vmem:[#allocation9 + $0x190] sm:$0xff]  ;;  %v492_v32 = vld [vmem:[#allocation9 + $0x188] sm:$0xff] }
  0x8e   : > { %585 = vmatpush1.msra.mxu1 %v465_v19  ;;  %515 = vmatprep.subr.mxu0 %v498_v20  ;;  %v460_v29 = vld [vmem:[#allocation9 + $0x98] sm:$0xff]  ;;  %v459_v31 = vld [vmem:[#allocation9 + $0x90] sm:$0xff]  ;;  %v458_v33 = vld [vmem:[#allocation9 + $0x88] sm:$0xff] }
  0x8f   : > { %586 = vmatprep.subr.mxu1 %v464_v21  ;;  %516 = vmatpush1.msra.mxu0 %v497_v22  ;;  %v491_v34 = vld [vmem:[#allocation9 + $0x180] sm:$0xff]  ;;  %v490_v36 = vld [vmem:[#allocation9 + $0x178] sm:$0xff]  ;;  %v489_v38 = vld [vmem:[#allocation9 + $0x170] sm:$0xff] }
  0x90   : > { %587 = vmatpush1.msra.mxu1 %v463_v23  ;;  %517 = vmatprep.subr.mxu0 %v496_v24  ;;  %v457_v35 = vld [vmem:[#allocation9 + $0x80] sm:$0xff]  ;;  %v456_v37 = vld [vmem:[#allocation9 + $0x78] sm:$0xff]  ;;  %v455_v39 = vld [vmem:[#allocation9 + $0x70] sm:$0xff] }
  0x91   : > { %588 = vmatprep.subr.mxu1 %v462_v25  ;;  %518 = vmatpush1.msra.mxu0 %v495_v26  ;;  %v488_v40 = vld [vmem:[#allocation9 + $0x168] sm:$0xff]  ;;  %v487_v42 = vld [vmem:[#allocation9 + $0x160] sm:$0xff]  ;;  %v486_v44 = vld [vmem:[#allocation9 + $0x158] sm:$0xff] }
  0x92   : > { %589 = vmatpush1.msra.mxu1 %v461_v27  ;;  %519 = vmatprep.subr.mxu0 %v494_v28  ;;  %v454_v41 = vld [vmem:[#allocation9 + $0x68] sm:$0xff]  ;;  %v453_v43 = vld [vmem:[#allocation9 + $0x60] sm:$0xff]  ;;  %v452_v45 = vld [vmem:[#allocation9 + $0x58] sm:$0xff] }
  0x93   : > { %590 = vmatprep.subr.mxu1 %v460_v29  ;;  %520 = vmatpush1.msra.mxu0 %v493_v30  ;;  %v485_v46 = vld [vmem:[#allocation9 + $0x150] sm:$0xff]  ;;  %v484_v48 = vld [vmem:[#allocation9 + $0x148] sm:$0xff]  ;;  %v483_v50 = vld [vmem:[#allocation9 + $0x140] sm:$0xff] }
  0x94   : > { %591 = vmatpush1.msra.mxu1 %v459_v31  ;;  %521 = vmatprep.subr.mxu0 %v492_v32  ;;  %v451_v47 = vld [vmem:[#allocation9 + $0x50] sm:$0xff]  ;;  %v450_v49 = vld [vmem:[#allocation9 + $0x48] sm:$0xff]  ;;  %v449_v51 = vld [vmem:[#allocation9 + $0x40] sm:$0xff] }
  0x95   : > { %592 = vmatprep.subr.mxu1 %v458_v33  ;;  %522 = vmatpush1.msra.mxu0 %v491_v34  ;;  %v482_v52 = vld [vmem:[#allocation9 + $0x138] sm:$0xff]  ;;  %v481_v54 = vld [vmem:[#allocation9 + $0x130] sm:$0xff]  ;;  %v480_v56 = vld [vmem:[#allocation9 + $0x128] sm:$0xff] }
  0x96   : > { %593 = vmatpush1.msra.mxu1 %v457_v35  ;;  %523 = vmatprep.subr.mxu0 %v490_v36  ;;  %v448_v53 = vld [vmem:[#allocation9 + $0x38] sm:$0xff]  ;;  %v447_v55 = vld [vmem:[#allocation9 + $0x30] sm:$0xff]  ;;  %v446_v57 = vld [vmem:[#allocation9 + $0x28] sm:$0xff] }
  0x97   : > { %594 = vmatprep.subr.mxu1 %v456_v37  ;;  %524 = vmatpush1.msra.mxu0 %v489_v38  ;;  %v479_v58 = vld [vmem:[#allocation9 + $0x120] sm:$0xff]  ;;  %v478_v60 = vld [vmem:[#allocation9 + $0x118] sm:$0xff]  ;;  %v477_v62 = vld [vmem:[#allocation9 + $0x110] sm:$0xff] }
  0x98   : > { %595 = vmatpush1.msra.mxu1 %v455_v39  ;;  %525 = vmatprep.subr.mxu0 %v488_v40  ;;  %v445_v59 = vld [vmem:[#allocation9 + $0x20] sm:$0xff]  ;;  %v444_v61 = vld [vmem:[#allocation9 + $0x18] sm:$0xff]  ;;  %v443_v63 = vld [vmem:[#allocation9 + $0x10] sm:$0xff] }
  0x99   : > { %596 = vmatprep.subr.mxu1 %v454_v41  ;;  %526 = vmatpush1.msra.mxu0 %v487_v42  ;;  %v476_v1 = vld [vmem:[#allocation9 + $0x108] sm:$0xff]  ;;  %v475_v3 = vld [vmem:[#allocation9 + $0x100] sm:$0xff]  ;;  %v473_v5 = vld [vmem:[#allocation2 + $0x7] sm:$0xff] }
  0x9a   : > { %597 = vmatpush1.msra.mxu1 %v453_v43  ;;  %527 = vmatprep.subr.mxu0 %v486_v44  ;;  %v442_v2 = vld [vmem:[#allocation9 + $0x8] sm:$0xff]  ;;  %v441_v4 = vld [vmem:[#allocation9] sm:$0xff]  ;;  %v440_v6 = vld [vmem:[#allocation2 + $0x6] sm:$0xff] }
  0x9b   : > { %598 = vmatprep.subr.mxu1 %v452_v45  ;;  %528 = vmatpush1.msra.mxu0 %v485_v46  ;;  %v682_v8 = vld [vmem:[#allocation9 + $0x2f8] sm:$0xff]  ;;  %v681_v9 = vld [vmem:[#allocation9 + $0x2f0] sm:$0xff]  ;;  %v680_v10 = vld [vmem:[#allocation9 + $0x2e8] sm:$0xff] }
  0x9c   : > { %599 = vmatpush1.msra.mxu1 %v451_v47  ;;  %529 = vmatprep.subr.mxu0 %v484_v48  ;;  %v679_v11 = vld [vmem:[#allocation9 + $0x2e0] sm:$0xff]  ;;  %v678_v12 = vld [vmem:[#allocation9 + $0x2d8] sm:$0xff]  ;;  %v677_v13 = vld [vmem:[#allocation9 + $0x2d0] sm:$0xff] }
  0x9d   : > { %600 = vmatprep.subr.mxu1 %v450_v49  ;;  %530 = vmatpush1.msra.mxu0 %v483_v50  ;;  %v676_v14 = vld [vmem:[#allocation9 + $0x2c8] sm:$0xff]  ;;  %v675_v15 = vld [vmem:[#allocation9 + $0x2c0] sm:$0xff]  ;;  %v674_v16 = vld [vmem:[#allocation9 + $0x2b8] sm:$0xff] }
  0x9e   : > { %601 = vmatpush1.msra.mxu1 %v449_v51  ;;  %531 = vmatprep.subr.mxu0 %v482_v52  ;;  %v673_v17 = vld [vmem:[#allocation9 + $0x2b0] sm:$0xff]  ;;  %v672_v18 = vld [vmem:[#allocation9 + $0x2a8] sm:$0xff]  ;;  %v671_v19 = vld [vmem:[#allocation9 + $0x2a0] sm:$0xff] }
  0x9f   : > { %602 = vmatprep.subr.mxu1 %v448_v53  ;;  %532 = vmatpush1.msra.mxu0 %v481_v54  ;;  %v670_v20 = vld [vmem:[#allocation9 + $0x298] sm:$0xff]  ;;  %v669_v21 = vld [vmem:[#allocation9 + $0x290] sm:$0xff]  ;;  %v668_v22 = vld [vmem:[#allocation9 + $0x288] sm:$0xff] }
  0xa0   : > { %603 = vmatpush1.msra.mxu1 %v447_v55  ;;  %533 = vmatprep.subr.mxu0 %v480_v56  ;;  %v667_v23 = vld [vmem:[#allocation9 + $0x280] sm:$0xff]  ;;  %v666_v24 = vld [vmem:[#allocation9 + $0x278] sm:$0xff]  ;;  %v665_v25 = vld [vmem:[#allocation9 + $0x270] sm:$0xff]  ;;  %v758_v56 = vlaneseq }
  0xa1   : > { %604 = vmatprep.subr.mxu1 %v446_v57  ;;  %534 = vmatpush1.msra.mxu0 %v479_v58  ;;  %v664_v26 = vld [vmem:[#allocation9 + $0x268] sm:$0xff]  ;;  %v663_v27 = vld [vmem:[#allocation9 + $0x260] sm:$0xff]  ;;  %v662_v28 = vld [vmem:[#allocation9 + $0x258] sm:$0xff] }
  0xa2   : > { %605 = vmatpush1.msra.mxu1 %v445_v59  ;;  %535 = vmatprep.subr.mxu0 %v478_v60  ;;  %v661_v29 = vld [vmem:[#allocation9 + $0x250] sm:$0xff]  ;;  %v660_v30 = vld [vmem:[#allocation9 + $0x248] sm:$0xff]  ;;  %v659_v31 = vld [vmem:[#allocation9 + $0x240] sm:$0xff]  ;;  %v759_v57 = vshrl.u32 %v758_v56, 7 }
  0xa3   : > { %606 = vmatprep.subr.mxu1 %v444_v61  ;;  %536 = vmatpush1.msra.mxu0 %v477_v62  ;;  %v658_v32 = vld [vmem:[#allocation9 + $0x238] sm:$0xff]  ;;  %v657_v33 = vld [vmem:[#allocation9 + $0x230] sm:$0xff]  ;;  %v656_v34 = vld [vmem:[#allocation9 + $0x228] sm:$0xff] }
  0xa4   : > { %607 = vmatpush1.msra.mxu1 %v443_v63  ;;  %537 = vmatprep.subr.mxu0 %v476_v1  ;;  %v655_v35 = vld [vmem:[#allocation9 + $0x220] sm:$0xff]  ;;  %v654_v36 = vld [vmem:[#allocation9 + $0x218] sm:$0xff]  ;;  %v653_v37 = vld [vmem:[#allocation9 + $0x210] sm:$0xff]  ;;  %v764_v60 = vsub.s32 1, %v759_v57 }
  0xa5   : > { %608 = vmatprep.subr.mxu1 %v442_v2  ;;  %538 = vmatpush1.msra.mxu0 %v475_v3  ;;  %v652_v38 = vld [vmem:[#allocation9 + $0x208] sm:$0xff]  ;;  %v651_v39 = vld [vmem:[#allocation9 + $0x200] sm:$0xff]  ;;  %v806_v40 = vld [vmem:[#allocation11 + $0xf8] sm:$0xff] }
  0xa6   : > { %571 = vmatprep.mubr.f32.mxu0 %v2626_v7  ;;  %609 = vmatpush1.msra.mxu1 %v441_v4  ;;  %v788_v41 = vld [vmem:[#allocation11 + $0x78] sm:$0xff]  ;;  %v805_v42 = vld [vmem:[#allocation11 + $0xf0] sm:$0xff]  ;;  %v804_v44 = vld [vmem:[#allocation11 + $0xe8] sm:$0xff] }
  0xa7   : > { %642 = vmatprep.mubr.f32.mxu1 %v2626_v7  ;;  %572 = vmatmul.mubr.f32.vlgmr.msra.gmra.mxu0 %v473_v5  ;;  %v787_v43 = vld [vmem:[#allocation11 + $0x70] sm:$0xff]  ;;  %v786_v45 = vld [vmem:[#allocation11 + $0x68] sm:$0xff]  ;;  %v785_v46 = vld [vmem:[#allocation11 + $0x60] sm:$0xff] }
  0xa8   : > { %643 = vmatmul.mubr.f32.vlgmr.msra.gmra.mxu1 %v440_v6  ;;  %683 = vmatprep.subr.mxu0 %v682_v8  ;;  %v802_v47 = vld [vmem:[#allocation11 + $0xd8] sm:$0xff]  ;;  %v801_v49 = vld [vmem:[#allocation11 + $0xd0] sm:$0xff]  ;;  %v800_v51 = vld [vmem:[#allocation11 + $0xc8] sm:$0xff] }
  0xa9   : > { %747 = vmatprep.mubr.f32.mxu0 %v2626_v7  ;;  %684 = vmatpush1.msra.mxu0 %v681_v9  ;;  %v784_v48 = vld [vmem:[#allocation11 + $0x58] sm:$0xff]  ;;  %v783_v50 = vld [vmem:[#allocation11 + $0x50] sm:$0xff]  ;;  %v782_v52 = vld [vmem:[#allocation11 + $0x48] sm:$0xff] }
  0xaa   : > { %1936 = vmatprep.subr.mxu1 %v2626_v7  ;;  %685 = vmatprep.subr.mxu0 %v680_v10  ;;  %v799_v53 = vld [vmem:[#allocation11 + $0xc0] sm:$0xff]  ;;  %v798_v55 = vld [vmem:[#allocation11 + $0xb8] sm:$0xff]  ;;  %v797_v59 = vld [vmem:[#allocation11 + $0xb0] sm:$0xff] }
  0xab   : > { %686 = vmatpush1.msra.mxu0 %v679_v11  ;;  %1937 = vmatpush3.msra.mxu1 %v806_v40  ;;  %v781_v54 = vld [vmem:[#allocation11 + $0x40] sm:$0xff]  ;;  %v780_v58 = vld [vmem:[#allocation11 + $0x38] sm:$0xff]  ;;  %v779_v61 = vld [vmem:[#allocation11 + $0x30] sm:$0xff] }
  0xac   : > { %687 = vmatprep.subr.mxu0 %v678_v12  ;;  %1938 = vmatprep.subr.mxu1 %v2626_v7  ;;  %v756_v62 = vld [vmem:[%s3109_s2] sm:$0x3]  ;;  %v796_v63 = vld [vmem:[#allocation11 + $0xa8] sm:$0xff]  ;;  %v795_v3 = vld [vmem:[#allocation11 + $0xa0] sm:$0xff] }
  0xad   : > { %688 = vmatpush1.msra.mxu0 %v677_v13  ;;  %1939 = vmatpush3.msra.mxu1 %v805_v42  ;;  %v765_v1 = vrot.slane %v756_v62, %v764_v60  ;;  %v778_v2 = vld [vmem:[#allocation11 + $0x28] sm:$0xff]  ;;  %v777_v4 = vld [vmem:[#allocation11 + $0x20] sm:$0xff]  ;;  %v794_v5 = vld [vmem:[#allocation11 + $0x98] sm:$0xff] }
  0xae   : > { %689 = vmatprep.subr.mxu0 %v676_v14  ;;  %1940 = vmatprep.subr.mxu1 %v2626_v7  ;;  %v776_v6 = vld [vmem:[#allocation11 + $0x18] sm:$0xff]  ;;  %v793_v8 = vld [vmem:[#allocation11 + $0x90] sm:$0xff]  ;;  %v792_v10 = vld [vmem:[#allocation11 + $0x88] sm:$0xff] }
  0xaf   : > { %690 = vmatpush1.msra.mxu0 %v675_v15  ;;  %1941 = vmatpush3.msra.mxu1 %v804_v44  ;;  %v775_v9 = vld [vmem:[#allocation11 + $0x10] sm:$0xff]  ;;  %v774_v11 = vld [vmem:[#allocation11 + $0x8] sm:$0xff]  ;;  %v791_v12 = vld [vmem:[#allocation11 + $0x80] sm:$0xff] }
  0xb0   : > { %691 = vmatprep.subr.mxu0 %v674_v16  ;;  %1942 = vmatprep.subr.mxu1 %v2626_v7  ;;  %v773_v13 = vld [vmem:[#allocation11] sm:$0xff]  ;;  %v760_v16 = vsub.s32 0, %v759_v57  ;;  %v955_v40 = vld [vmem:[#allocation11 + $0x130] sm:$0xff] }
  0xb1   : > { %692 = vmatpush1.msra.mxu0 %v673_v17  ;;  %1968 = vmatprep.mubr.msk.f32.mxu1 %vm2627_vm0, %v2626_v7  ;;  %v953_v42 = vld [vmem:[#allocation11 + $0x120] sm:$0xff]  ;;  %v951_v44 = vld [vmem:[#allocation11 + $0x110] sm:$0xff] }
  0xb2   : > { %693 = vmatprep.subr.mxu0 %v672_v18 }
  0xb3   : > { %694 = vmatpush1.msra.mxu0 %v671_v19 }
  0xb4   : > { %695 = vmatprep.subr.mxu0 %v670_v20  ;;  %v761_v20 = vrot.slane %v756_v62, %v760_v16 }
  0xb5   : > { %696 = vmatpush1.msra.mxu0 %v669_v21 }
  0xb6   : > { %697 = vmatprep.subr.mxu0 %v668_v22 }
  0xb7   : > { %698 = vmatpush1.msra.mxu0 %v667_v23 }
  0xb8   : > { %699 = vmatprep.subr.mxu0 %v666_v24 }
  0xb9   : > { %700 = vmatpush1.msra.mxu0 %v665_v25 }
  0xba   : > { %701 = vmatprep.subr.mxu0 %v664_v26 }
  0xbb   : > { %702 = vmatpush1.msra.mxu0 %v663_v27 }
  0xbc   : > { %703 = vmatprep.subr.mxu0 %v662_v28 }
  0xbd   : > { %704 = vmatpush1.msra.mxu0 %v661_v29  ;;  %v964_v29 = vld [vmem:[#allocation11 + $0x178] sm:$0xff] }
  0xbe   : > { %705 = vmatprep.subr.mxu0 %v660_v30 }
  0xbf   : > { %706 = vmatpush1.msra.mxu0 %v659_v31 }
  0xc0   : > { %707 = vmatprep.subr.mxu0 %v658_v32  ;;  %v963_v32 = vld [vmem:[#allocation11 + $0x170] sm:$0xff] }
  0xc1   : > { %708 = vmatpush1.msra.mxu0 %v657_v33  ;;  %v962_v33 = vld [vmem:[#allocation11 + $0x168] sm:$0xff] }
  0xc2   : > { %709 = vmatprep.subr.mxu0 %v656_v34  ;;  %v961_v34 = vld [vmem:[#allocation11 + $0x160] sm:$0xff] }
  0xc3   : > { %710 = vmatpush1.msra.mxu0 %v655_v35  ;;  %v960_v35 = vld [vmem:[#allocation11 + $0x158] sm:$0xff] }
  0xc4   : > { %711 = vmatprep.subr.mxu0 %v654_v36  ;;  %v959_v36 = vld [vmem:[#allocation11 + $0x150] sm:$0xff] }
  0xc5   : > { %712 = vmatpush1.msra.mxu0 %v653_v37  ;;  %v958_v37 = vld [vmem:[#allocation11 + $0x148] sm:$0xff] }
  0xc6   : > { %713 = vmatprep.subr.mxu0 %v652_v38  ;;  %v957_v38 = vld [vmem:[#allocation11 + $0x140] sm:$0xff] }
  0xc7   : > { %714 = vmatpush1.msra.mxu0 %v651_v39  ;;  %v956_v39 = vld [vmem:[#allocation11 + $0x138] sm:$0xff] }
  0xc8   : > { %748 = vmatmul.mubr.f32.vlgmr.msra.gmra.mxu0 %v2852_v0  ;;  %1971 = vmatprep.subr.mxu0 %v2626_v7  ;;  %v803_v0 = vld [vmem:[#allocation11 + $0xe0] sm:$0xff] }
  0xc9   : > { %1972 = vmatpush3.msra.mxu0 %v788_v41  ;;  %1943 = vmatpush3.msra.mxu1 %v803_v0  ;;  %v954_v41 = vld [vmem:[#allocation11 + $0x128] sm:$0xff]  ;;  %v949_v0 = vld [vmem:[#allocation11 + $0x100] sm:$0xff] }
  0xca   : > { %1973 = vmatprep.subr.mxu0 %v2626_v7  ;;  %1944 = vmatprep.subr.mxu1 %v2626_v7 }
  0xcb   : > { %1974 = vmatpush3.msra.mxu0 %v787_v43  ;;  %1945 = vmatpush3.msra.mxu1 %v802_v47  ;;  %v952_v43 = vld [vmem:[#allocation11 + $0x118] sm:$0xff] }
  0xcc   : > { %1975 = vmatprep.subr.mxu0 %v2626_v7  ;;  %1946 = vmatprep.subr.mxu1 %v2626_v7 }
  0xcd   : > { %1976 = vmatpush3.msra.mxu0 %v786_v45  ;;  %1947 = vmatpush3.msra.mxu1 %v801_v49  ;;  %v950_v45 = vld [vmem:[#allocation11 + $0x108] sm:$0xff] }
  0xce   : > { %1977 = vmatprep.subr.mxu0 %v2626_v7  ;;  %1948 = vmatprep.subr.mxu1 %v2626_v7 }
  0xcf   : > { %1978 = vmatpush3.msra.mxu0 %v785_v46  ;;  %1949 = vmatpush3.msra.mxu1 %v800_v51 }
  0xd0   : > { %1979 = vmatprep.subr.mxu0 %v2626_v7  ;;  %1950 = vmatprep.subr.mxu1 %v2626_v7 }
  0xd1   : > { %1980 = vmatpush3.msra.mxu0 %v784_v48  ;;  %1951 = vmatpush3.msra.mxu1 %v799_v53 }
  0xd2   : > { %1981 = vmatprep.subr.mxu0 %v2626_v7  ;;  %1952 = vmatprep.subr.mxu1 %v2626_v7 }
  0xd3   : > { %1982 = vmatpush3.msra.mxu0 %v783_v50  ;;  %1953 = vmatpush3.msra.mxu1 %v798_v55 }
  0xd4   : > { %1983 = vmatprep.subr.mxu0 %v2626_v7  ;;  %1954 = vmatprep.subr.mxu1 %v2626_v7 }
  0xd5   : > { %1984 = vmatpush3.msra.mxu0 %v782_v52  ;;  %1955 = vmatpush3.msra.mxu1 %v797_v59  ;;  %v1773_v52 = vld [vmem:[%s3111_s4] ss:$0 sm:$0xff] }
  0xd6   : > { %1985 = vmatprep.subr.mxu0 %v2626_v7  ;;  %1956 = vmatprep.subr.mxu1 %v2626_v7 }
  0xd7   : > { %1986 = vmatpush3.msra.mxu0 %v781_v54  ;;  %1957 = vmatpush3.msra.mxu1 %v796_v63 }
  0xd8   : > { %1987 = vmatprep.subr.mxu0 %v2626_v7  ;;  %1958 = vmatprep.subr.mxu1 %v2626_v7 }
  0xd9   : > { %1988 = vmatpush3.msra.mxu0 %v780_v58  ;;  %1959 = vmatpush3.msra.mxu1 %v795_v3 }
  0xda   : > { %1989 = vmatprep.subr.mxu0 %v2626_v7  ;;  %1960 = vmatprep.subr.mxu1 %v2626_v7 }
  0xdb   : > { %1990 = vmatpush3.msra.mxu0 %v779_v61  ;;  %1961 = vmatpush3.msra.mxu1 %v794_v5 }
  0xdc   : > { %1991 = vmatprep.subr.mxu0 %v2626_v7  ;;  %1962 = vmatprep.subr.mxu1 %v2626_v7 }
  0xdd   : > { %1992 = vmatpush3.msra.mxu0 %v778_v2  ;;  %1963 = vmatpush3.msra.mxu1 %v793_v8 }
  0xde   : > { %1993 = vmatprep.subr.mxu0 %v2626_v7  ;;  %1964 = vmatprep.subr.mxu1 %v2626_v7 }
  0xdf   : > { %1994 = vmatpush3.msra.mxu0 %v777_v4  ;;  %1965 = vmatpush3.msra.mxu1 %v792_v10 }
  0xe0   : > { %1995 = vmatprep.subr.mxu0 %v2626_v7  ;;  %1966 = vmatprep.subr.mxu1 %v2626_v7 }
  0xe1   : > { %1996 = vmatpush3.msra.mxu0 %v776_v6  ;;  %1967 = vmatpush3.msra.mxu1 %v791_v12 }
  0xe2   : > { %1997 = vmatprep.subr.mxu0 %v2626_v7  ;;  %2003 = vmatprep.mubr.msk.f32.mxu0 %vm2627_vm0, %v2626_v7 }
  0xe3   : > { %1998 = vmatpush3.msra.mxu0 %v775_v9  ;;  %2006 = vmatprep.subr.mxu1 %v2626_v7 }
  0xe4   : > { %1999 = vmatprep.subr.mxu0 %v2626_v7 }
  0xe5   : > { %2000 = vmatpush3.msra.mxu0 %v774_v11 }
  0xe6   : > { %2001 = vmatprep.subr.mxu0 %v2626_v7 }
  0xe7   : > { %2002 = vmatpush3.msra.mxu0 %v773_v13 }
 0x167   : > { %v573_v14 = vpop.f32.mrf.mxu0 }
 0x168   : > { %v644_v15 = vpop.f32.mrf.mxu1 }
 0x169   : > { %v575_v17 = vpop.f32.mrf.mxu0  ;;  %v645_v19 = vadd.f32 %v644_v15, %v573_v14 }
 0x16a   : > { %v646_v18 = vpop.f32.mrf.mxu1 }
 0x16b   : > { %v647_v22 = vadd.f32 %v646_v18, %v575_v17 }
 0x188   : > { %v749_v21 = vpop.f32.mrf.mxu0 }
 0x189   : > { %v754_v23 = vadd.f32 %v749_v21, %v645_v19 }
 0x18a   : > { %v751_v24 = vpop.f32.mrf.mxu0 }
 0x18b   : > { %v768_v25 = vadd.f32 %v761_v20, %v754_v23  ;;  %v755_v26 = vadd.f32 %v751_v24, %v647_v22 }
 0x18d   : > { %v770_v27 = vmax.f32 %v768_v25, 0.0  ;;  %v2907_v28 = vadd.f32 %v765_v1, %v755_v26 }
 0x18f   : > { %771 = vst [vmem:[#allocation3 + $0x8] sm:$0xff] %v770_v27 }
 0x196   : > { %v789_v30 = vld [vmem:[#allocation3 + $0x7] sm:$0xff] }
 0x197   : > { %v772_v31 = vld [vmem:[#allocation3 + $0x6] sm:$0xff]  ;;  %1969 = vmatmul.mubr.f32.vlgmr.msra.gmra.mxu1 %v789_v30 }
 0x198   : > { %2004 = vmatmul.mubr.f32.vlgmr.msra.gmra.mxu0 %v772_v31  ;;  %2007 = vmatpush3.msra.mxu1 %v964_v29 }
 0x199   : > { %2038 = vmatprep.mubr.msk.f32.mxu1 %vm2627_vm0, %v2626_v7  ;;  %2008 = vmatprep.subr.mxu1 %v2626_v7 }
 0x19a   : > { %2009 = vmatpush3.msra.mxu1 %v963_v32 }
 0x19b   : > { %2010 = vmatprep.subr.mxu1 %v2626_v7 }
 0x19c   : > { %2011 = vmatpush3.msra.mxu1 %v962_v33 }
 0x19d   : > { %2012 = vmatprep.subr.mxu1 %v2626_v7 }
 0x19e   : > { %2013 = vmatpush3.msra.mxu1 %v961_v34 }
 0x19f   : > { %2014 = vmatprep.subr.mxu1 %v2626_v7 }
 0x1a0   : > { %2015 = vmatpush3.msra.mxu1 %v960_v35 }
 0x1a1   : > { %2016 = vmatprep.subr.mxu1 %v2626_v7 }
 0x1a2   : > { %2017 = vmatpush3.msra.mxu1 %v959_v36 }
 0x1a3   : > { %2018 = vmatprep.subr.mxu1 %v2626_v7 }
 0x1a4   : > { %2019 = vmatpush3.msra.mxu1 %v958_v37 }
 0x1a5   : > { %2020 = vmatprep.subr.mxu1 %v2626_v7 }
 0x1a6   : > { %2021 = vmatpush3.msra.mxu1 %v957_v38 }
 0x1a7   : > { %2022 = vmatprep.subr.mxu1 %v2626_v7 }
 0x1a8   : > { %2023 = vmatpush3.msra.mxu1 %v956_v39 }
 0x1a9   : > { %2024 = vmatprep.subr.mxu1 %v2626_v7 }
 0x1aa   : > { %2025 = vmatpush3.msra.mxu1 %v955_v40 }
 0x1ab   : > { %2026 = vmatprep.subr.mxu1 %v2626_v7 }
 0x1ac   : > { %2027 = vmatpush3.msra.mxu1 %v954_v41 }
 0x1ad   : > { %2028 = vmatprep.subr.mxu1 %v2626_v7 }
 0x1ae   : > { %2029 = vmatpush3.msra.mxu1 %v953_v42 }
 0x1af   : > { %2030 = vmatprep.subr.mxu1 %v2626_v7 }
 0x1b0   : > { %2031 = vmatpush3.msra.mxu1 %v952_v43 }
 0x1b1   : > { %2032 = vmatprep.subr.mxu1 %v2626_v7 }
 0x1b2   : > { %2033 = vmatpush3.msra.mxu1 %v951_v44 }
 0x1b3   : > { %2034 = vmatprep.subr.mxu1 %v2626_v7 }
 0x1b4   : > { %2035 = vmatpush3.msra.mxu1 %v950_v45 }
 0x1b5   : > { %2036 = vmatprep.subr.mxu1 %v2626_v7 }
 0x1b6   : > { %2037 = vmatpush3.msra.mxu1 %v949_v0 }
 0x1b7   : > { %2039 = vmatmul.mubr.f32.vlgmr.msra.gmra.mxu1 %v770_v27 }
 0x257   : > { %v873_v46 = vpop.f32.mrf.mxu1 }
 0x258   : > { %v943_v47 = vpop.f32.mrf.mxu0 }
 0x259   : > { %v1970_v48 = vpop.f32.mrf.mxu1  ;;  %v944_v50 = vadd.f32 %v943_v47, %v873_v46 }
 0x25a   : > { %v2005_v49 = vpop.f32.mrf.mxu0 }
 0x277   : > { %v1031_v51 = vpop.f32.mrf.mxu1 }
 0x278   : > { %v1035_v53 = vadd.f32 %v1031_v51, %v944_v50 }
 0x279   : > { %v2040_v54 = vpop.f32.mrf.mxu1 }
 0x27a   : > { %v1043_v55 = vadd.f32 %v1773_v52, %v1035_v53 }
 0x27c   : > { %v1044_v56 = vmax.f32 %v1043_v55, 0.0 }
 0x27e   : > { %v1045_v57 = vadd.f32 %v1044_v56, %v2907_v28  ;;  %1051 = sbr.rel (%p1771_p3) target bundleno = 645 (0x285), region = 88 }
 0x280   : > { %vm1046_vm1 = vcmp.ge.f32.partialorder %v1045_v57, 0.0  ;;  %v1047_v58 = vmul.f32 0.01, %v1045_v57 }
 0x282   : > { %v2930_v59 = vsel %vm1046_vm1, %v1045_v57, %v1047_v58 }
 0x283   : > { %v2628_v60 = vmov 0.0  }
 0x284   : > { %1052 = vst [vmem:[#allocation4] sm:$0xff] %v2628_v60  ;;  %1053 = vst [vmem:[#allocation5] sm:$0xff] %v2628_v60 }
 0x285 PF: > { %1056 = sbr.rel (%p1772_p9) target bundleno = 652 (0x28c), region = 92 }
 0x28a   : > { %v1057_v61 = vld [vmem:[#allocation4 + $0xc] sm:$0xf]  ;;  %v1058_v62 = vld [vmem:[#allocation5 + $0xc] sm:$0xf] }
 0x28b   : > { %1059 = vst [vmem:[#allocation4 + $0x4] sm:$0xf] %v1057_v61  ;;  %1060 = vst [vmem:[#allocation5 + $0x4] sm:$0xf] %v1058_v62 }
 0x28c PF: > { %2041 = vmatprep.subr.mxu0 %v2626_v7  ;;  %v1096_v63 = vld [vmem:[#allocation12 + $0xf8] sm:$0xff]  ;;  %2076 = vmatprep.subr.mxu1 %v2626_v7  ;;  %v1095_v2 = vld [vmem:[#allocation12 + $0xf0] sm:$0xff]  ;;  %1061 = vst [vmem:[#allocation4 + $0x8] sm:$0xff] %v2930_v59  ;;  %v1094_v4 = vld [vmem:[#allocation12 + $0xe8] sm:$0xff]  ;;  %s1779_s17 = sshll.u32 %s2602_s13, 1  ;;  %s1630_s7 = sshll.u32 %s2854_s30, 4  ;;  %s1631_s7 = int_to_ptr.vmem [resolvable:$true] %s1630_s7 }
 0x28d   : > { %v1078_v1 = vld [vmem:[#allocation12 + $0x78] sm:$0xff]  ;;  %2042 = vmatpush3.msra.mxu0 %v1096_v63  ;;  %v1077_v3 = vld [vmem:[#allocation12 + $0x70] sm:$0xff]  ;;  %v1076_v5 = vld [vmem:[#allocation12 + $0x68] sm:$0xff]  ;;  %2073 = vmatprep.mubr.msk.f32.mxu0 %vm2627_vm0, %v2626_v7  ;;  %s1626_s1 = sadd.s32 %s2598_s12, %s1779_s17  ;;  %s3146_s9 = sld [smem:[#allocation28_spill]] }
 0x28e   : > { %2077 = vmatpush3.msra.mxu1 %v1078_v1  ;;  %2043 = vmatprep.subr.mxu0 %v2626_v7  ;;  %v1093_v6 = vld [vmem:[#allocation12 + $0xe0] sm:$0xff]  ;;  %v1092_v9 = vld [vmem:[#allocation12 + $0xd8] sm:$0xff]  ;;  %v1091_v11 = vld [vmem:[#allocation12 + $0xd0] sm:$0xff]  ;;  %s1780_s5 = sshll.u32 %s1626_s1, 7  ;;  %s1615_s13 = scalar_lea.sflag [#allocation8], %s2836_s23 }
 0x28f   : > { %2078 = vmatprep.subr.mxu1 %v2626_v7  ;;  %2044 = vmatpush3.msra.mxu0 %v1095_v2  ;;  %v1075_v8 = vld [vmem:[#allocation12 + $0x60] sm:$0xff]  ;;  %v1074_v10 = vld [vmem:[#allocation12 + $0x58] sm:$0xff]  ;;  %v1073_v12 = vld [vmem:[#allocation12 + $0x50] sm:$0xff]  ;;  %s2510_s18 = scalar_lea.vmem %s1631_s7, 128  ;;  %p3147_p10 = scmp.ne.s32.totalorder %s3142_s24, 0 }
 0x290   : > { %2079 = vmatpush3.msra.mxu1 %v1077_v3  ;;  %2045 = vmatprep.subr.mxu0 %v2626_v7  ;;  %v1090_v13 = vld [vmem:[#allocation12 + $0xc8] sm:$0xff]  ;;  %v1089_v15 = vld [vmem:[#allocation12 + $0xc0] sm:$0xff]  ;;  %v1088_v17 = vld [vmem:[#allocation12 + $0xb8] sm:$0xff]  ;;  %p2511_p1 = scmp.ne.s32.totalorder %s1631_s7, %s2510_s18  ;;  %s2629_s12 = smov [#allocation15]  }
 0x291   : > { %2080 = vmatprep.subr.mxu1 %v2626_v7  ;;  %2046 = vmatpush3.msra.mxu0 %v1094_v4  ;;  %v1072_v14 = vld [vmem:[#allocation12 + $0x48] sm:$0xff]  ;;  %v1071_v16 = vld [vmem:[#allocation12 + $0x40] sm:$0xff]  ;;  %v1070_v18 = vld [vmem:[#allocation12 + $0x38] sm:$0xff]  ;;  %s2514_s19 = sshll.u32 %s2629_s12, 4  ;;  %s2515_s19 = int_to_ptr.vmem [resolvable:$false] %s2514_s19 }
 0x292   : > { %2081 = vmatpush3.msra.mxu1 %v1076_v5  ;;  %2047 = vmatprep.subr.mxu0 %v2626_v7  ;;  %v1087_v19 = vld [vmem:[#allocation12 + $0xb0] sm:$0xff]  ;;  %v1086_v21 = vld [vmem:[#allocation12 + $0xa8] sm:$0xff]  ;;  %v1085_v23 = vld [vmem:[#allocation12 + $0xa0] sm:$0xff]  ;;  %p2512_p12 = pnand %p2511_p1, %p3147_p10  ;;  %s2516_s25 = scalar_lea.vmem %s2515_s19, 256 }
 0x293   : > { %2082 = vmatprep.subr.mxu1 %v2626_v7  ;;  %2048 = vmatpush3.msra.mxu0 %v1093_v6  ;;  %v1069_v20 = vld [vmem:[#allocation12 + $0x30] sm:$0xff]  ;;  %v1068_v22 = vld [vmem:[#allocation12 + $0x28] sm:$0xff]  ;;  %v1067_v24 = vld [vmem:[#allocation12 + $0x20] sm:$0xff]  ;;  %s3059_s15 = scalar_lea.hbm %s3146_s9, %s1780_s5  ;;  %p2517_p6 = scmp.lt.s32.totalorder %s1631_s7, %s2515_s19 }
 0x294   : > { %2083 = vmatpush3.msra.mxu1 %v1075_v8  ;;  %2049 = vmatprep.subr.mxu0 %v2626_v7  ;;  %v1084_v25 = vld [vmem:[#allocation12 + $0x98] sm:$0xff]  ;;  %v1083_v27 = vld [vmem:[#allocation12 + $0x90] sm:$0xff]  ;;  %v1082_v29 = vld [vmem:[#allocation12 + $0x88] sm:$0xff]  ;;  %p2513_p0 = pneg %p2512_p12  ;;  %p2518_p2 = scmp.lt.s32.totalorder %s2516_s25, %s2510_s18 }
 0x295   : > { %2084 = vmatprep.subr.mxu1 %v2626_v7  ;;  %2050 = vmatpush3.msra.mxu0 %v1092_v9  ;;  %v1066_v26 = vld [vmem:[#allocation12 + $0x18] sm:$0xff]  ;;  %v1065_v28 = vld [vmem:[#allocation12 + $0x10] sm:$0xff]  ;;  %v1064_v30 = vld [vmem:[#allocation12 + $0x8] sm:$0xff] }
 0x296   : > { %2085 = vmatpush3.msra.mxu1 %v1074_v10  ;;  %2051 = vmatprep.subr.mxu0 %v2626_v7  ;;  %v1081_v31 = vld [vmem:[#allocation12 + $0x80] sm:$0xff]  ;;  %v1079_v32 = vld [vmem:[#allocation4 + $0x6] sm:$0xff]  ;;  %v1252_v37 = vld [vmem:[#allocation12 + $0x168] sm:$0xff]  ;;  %p2519_p4 = por %p2518_p2, %p2517_p6 }
 0x297   : > { %2086 = vmatprep.subr.mxu1 %v2626_v7  ;;  %2052 = vmatpush3.msra.mxu0 %v1091_v11  ;;  %v1063_v33 = vld [vmem:[#allocation12] sm:$0xff]  ;;  %v1062_v34 = vld [vmem:[#allocation4 + $0x4] sm:$0xff]  ;;  %v1248_v41 = vld [vmem:[#allocation12 + $0x148] sm:$0xff] }
 0x298   : > { %2087 = vmatpush3.msra.mxu1 %v1073_v12  ;;  %2053 = vmatprep.subr.mxu0 %v2626_v7  ;;  %v1254_v35 = vld [vmem:[#allocation12 + $0x178] sm:$0xff]  ;;  %v1253_v36 = vld [vmem:[#allocation12 + $0x170] sm:$0xff]  ;;  %v1251_v38 = vld [vmem:[#allocation12 + $0x160] sm:$0xff]  ;;  %p2520_p7 = pnand %p2519_p4, %p2513_p0 }
 0x299   : > { %2088 = vmatprep.subr.mxu1 %v2626_v7  ;;  %2054 = vmatpush3.msra.mxu0 %v1090_v13  ;;  %v1250_v39 = vld [vmem:[#allocation12 + $0x158] sm:$0xff]  ;;  %v1249_v40 = vld [vmem:[#allocation12 + $0x150] sm:$0xff]  ;;  %v1247_v42 = vld [vmem:[#allocation12 + $0x140] sm:$0xff] }
 0x29a   : > { %2089 = vmatpush3.msra.mxu1 %v1072_v14  ;;  %2055 = vmatprep.subr.mxu0 %v2626_v7  ;;  %v1246_v43 = vld [vmem:[#allocation12 + $0x138] sm:$0xff]  ;;  %v1245_v44 = vld [vmem:[#allocation12 + $0x130] sm:$0xff]  ;;  %v1244_v45 = vld [vmem:[#allocation12 + $0x128] sm:$0xff] }
 0x29b   : > { %2090 = vmatprep.subr.mxu1 %v2626_v7  ;;  %2056 = vmatpush3.msra.mxu0 %v1089_v15  ;;  %v1243_v0 = vld [vmem:[#allocation12 + $0x120] sm:$0xff]  ;;  %v1242_v46 = vld [vmem:[#allocation12 + $0x118] sm:$0xff]  ;;  %v1241_v47 = vld [vmem:[#allocation12 + $0x110] sm:$0xff] }
 0x29c   : > { %2091 = vmatpush3.msra.mxu1 %v1071_v16  ;;  %2057 = vmatprep.subr.mxu0 %v2626_v7  ;;  %v1240_v48 = vld [vmem:[#allocation12 + $0x108] sm:$0xff]  ;;  %v1239_v49 = vld [vmem:[#allocation12 + $0x100] sm:$0xff]  ;;  %v1370_v50 = vld [vmem:[#allocation14 + $0xf8] sm:$0xff] }
 0x29d   : > { %2092 = vmatprep.subr.mxu1 %v2626_v7  ;;  %2058 = vmatpush3.msra.mxu0 %v1088_v17  ;;  %v1352_v51 = vld [vmem:[#allocation14 + $0x78] sm:$0xff]  ;;  %v1369_v52 = vld [vmem:[#allocation14 + $0xf0] sm:$0xff]  ;;  %v1368_v54 = vld [vmem:[#allocation14 + $0xe8] sm:$0xff] }
 0x29e   : > { %2093 = vmatpush3.msra.mxu1 %v1070_v18  ;;  %2059 = vmatprep.subr.mxu0 %v2626_v7  ;;  %v1351_v53 = vld [vmem:[#allocation14 + $0x70] sm:$0xff]  ;;  %v1350_v55 = vld [vmem:[#allocation14 + $0x68] sm:$0xff]  ;;  %v1367_v56 = vld [vmem:[#allocation14 + $0xe0] sm:$0xff] }
 0x29f   : > { %2094 = vmatprep.subr.mxu1 %v2626_v7  ;;  %2060 = vmatpush3.msra.mxu0 %v1087_v19  ;;  %v1349_v57 = vld [vmem:[#allocation14 + $0x60] sm:$0xff]  ;;  %v1366_v58 = vld [vmem:[#allocation14 + $0xd8] sm:$0xff]  ;;  %v1365_v61 = vld [vmem:[#allocation14 + $0xd0] sm:$0xff] }
 0x2a0   : > { %2095 = vmatpush3.msra.mxu1 %v1069_v20  ;;  %2061 = vmatprep.subr.mxu0 %v2626_v7  ;;  %v1348_v60 = vld [vmem:[#allocation14 + $0x58] sm:$0xff]  ;;  %v1347_v62 = vld [vmem:[#allocation14 + $0x50] sm:$0xff]  ;;  %v1364_v63 = vld [vmem:[#allocation14 + $0xc8] sm:$0xff] }
 0x2a1   : > { %2096 = vmatprep.subr.mxu1 %v2626_v7  ;;  %2062 = vmatpush3.msra.mxu0 %v1086_v21  ;;  %v1346_v1 = vld [vmem:[#allocation14 + $0x48] sm:$0xff]  ;;  %v1363_v2 = vld [vmem:[#allocation14 + $0xc0] sm:$0xff]  ;;  %v1362_v4 = vld [vmem:[#allocation14 + $0xb8] sm:$0xff] }
 0x2a2   : > { %2097 = vmatpush3.msra.mxu1 %v1068_v22  ;;  %2063 = vmatprep.subr.mxu0 %v2626_v7  ;;  %v1345_v3 = vld [vmem:[#allocation14 + $0x40] sm:$0xff]  ;;  %v1344_v5 = vld [vmem:[#allocation14 + $0x38] sm:$0xff]  ;;  %v1361_v6 = vld [vmem:[#allocation14 + $0xb0] sm:$0xff] }
 0x2a3   : > { %2098 = vmatprep.subr.mxu1 %v2626_v7  ;;  %2064 = vmatpush3.msra.mxu0 %v1085_v23  ;;  %v1343_v8 = vld [vmem:[#allocation14 + $0x30] sm:$0xff]  ;;  %v1360_v9 = vld [vmem:[#allocation14 + $0xa8] sm:$0xff]  ;;  %v1359_v11 = vld [vmem:[#allocation14 + $0xa0] sm:$0xff] }
 0x2a4   : > { %2099 = vmatpush3.msra.mxu1 %v1067_v24  ;;  %2065 = vmatprep.subr.mxu0 %v2626_v7  ;;  %v1342_v10 = vld [vmem:[#allocation14 + $0x28] sm:$0xff]  ;;  %v1341_v12 = vld [vmem:[#allocation14 + $0x20] sm:$0xff]  ;;  %v1358_v13 = vld [vmem:[#allocation14 + $0x98] sm:$0xff] }
 0x2a5   : > { %2100 = vmatprep.subr.mxu1 %v2626_v7  ;;  %2066 = vmatpush3.msra.mxu0 %v1084_v25  ;;  %v1340_v14 = vld [vmem:[#allocation14 + $0x18] sm:$0xff]  ;;  %v1357_v15 = vld [vmem:[#allocation14 + $0x90] sm:$0xff]  ;;  %v1356_v17 = vld [vmem:[#allocation14 + $0x88] sm:$0xff] }
 0x2a6   : > { %2101 = vmatpush3.msra.mxu1 %v1066_v26  ;;  %2067 = vmatprep.subr.mxu0 %v2626_v7  ;;  %v1339_v16 = vld [vmem:[#allocation14 + $0x10] sm:$0xff]  ;;  %v1338_v18 = vld [vmem:[#allocation14 + $0x8] sm:$0xff]  ;;  %v1355_v19 = vld [vmem:[#allocation14 + $0x80] sm:$0xff] }
 0x2a7   : > { %2102 = vmatprep.subr.mxu1 %v2626_v7  ;;  %2068 = vmatpush3.msra.mxu0 %v1083_v27  ;;  %v1337_v20 = vld [vmem:[#allocation14] sm:$0xff]  ;;  %v1776_v27 = vld [vmem:[%s3113_s6] ss:$0 sm:$0xff] }
 0x2a8   : > { %2103 = vmatpush3.msra.mxu1 %v1065_v28  ;;  %2069 = vmatprep.subr.mxu0 %v2626_v7 }
 0x2a9   : > { %2104 = vmatprep.subr.mxu1 %v2626_v7  ;;  %2070 = vmatpush3.msra.mxu0 %v1082_v29 }
 0x2aa   : > { %2105 = vmatpush3.msra.mxu1 %v1064_v30  ;;  %2071 = vmatprep.subr.mxu0 %v2626_v7 }
 0x2ab   : > { %2072 = vmatpush3.msra.mxu0 %v1081_v31  ;;  %2106 = vmatprep.subr.mxu1 %v2626_v7 }
 0x2ac   : > { %2074 = vmatmul.mubr.f32.vlgmr.msra.gmra.mxu0 %v1079_v32  ;;  %2107 = vmatpush3.msra.mxu1 %v1063_v33  ;;  %v1528_v32 = vld [vmem:[#allocation14 + $0x178] sm:$0xff] }
 0x2ad   : > { %2108 = vmatprep.mubr.msk.f32.mxu1 %vm2627_vm0, %v2626_v7  ;;  %2111 = vmatprep.subr.mxu0 %v2626_v7 }
 0x2ae   : > { %2109 = vmatmul.mubr.f32.vlgmr.msra.gmra.mxu1 %v1062_v34  ;;  %2112 = vmatpush3.msra.mxu0 %v1254_v35  ;;  %v1527_v35 = vld [vmem:[#allocation14 + $0x170] sm:$0xff] }
 0x2af   : > { %2113 = vmatprep.subr.mxu0 %v2626_v7  ;;  %2143 = vmatprep.mubr.msk.f32.mxu0 %vm2627_vm0, %v2626_v7 }
 0x2b0   : > { %2114 = vmatpush3.msra.mxu0 %v1253_v36  ;;  %2146 = vmatprep.subr.mxu1 %v2626_v7  ;;  %v1526_v36 = vld [vmem:[#allocation14 + $0x168] sm:$0xff] }
 0x2b1   : > { %2115 = vmatprep.subr.mxu0 %v2626_v7  ;;  %2178 = vmatprep.mubr.msk.f32.mxu1 %vm2627_vm0, %v2626_v7 }
 0x2b2   : > { %2116 = vmatpush3.msra.mxu0 %v1252_v37  ;;  %2147 = vmatpush3.msra.mxu1 %v1370_v50  ;;  %v1525_v37 = vld [vmem:[#allocation14 + $0x160] sm:$0xff] }
 0x2b3   : > { %2117 = vmatprep.subr.mxu0 %v2626_v7  ;;  %2148 = vmatprep.subr.mxu1 %v2626_v7 }
 0x2b4   : > { %2118 = vmatpush3.msra.mxu0 %v1251_v38  ;;  %2149 = vmatpush3.msra.mxu1 %v1369_v52  ;;  %v1524_v38 = vld [vmem:[#allocation14 + $0x158] sm:$0xff] }
 0x2b5   : > { %2119 = vmatprep.subr.mxu0 %v2626_v7  ;;  %2150 = vmatprep.subr.mxu1 %v2626_v7 }
 0x2b6   : > { %2120 = vmatpush3.msra.mxu0 %v1250_v39  ;;  %2151 = vmatpush3.msra.mxu1 %v1368_v54  ;;  %v1523_v39 = vld [vmem:[#allocation14 + $0x150] sm:$0xff] }
 0x2b7   : > { %2121 = vmatprep.subr.mxu0 %v2626_v7  ;;  %2152 = vmatprep.subr.mxu1 %v2626_v7 }
 0x2b8   : > { %2122 = vmatpush3.msra.mxu0 %v1249_v40  ;;  %2153 = vmatpush3.msra.mxu1 %v1367_v56  ;;  %v1522_v40 = vld [vmem:[#allocation14 + $0x148] sm:$0xff] }
 0x2b9   : > { %2123 = vmatprep.subr.mxu0 %v2626_v7  ;;  %2154 = vmatprep.subr.mxu1 %v2626_v7 }
 0x2ba   : > { %2124 = vmatpush3.msra.mxu0 %v1248_v41  ;;  %2155 = vmatpush3.msra.mxu1 %v1366_v58  ;;  %v1521_v41 = vld [vmem:[#allocation14 + $0x140] sm:$0xff] }
 0x2bb   : > { %2125 = vmatprep.subr.mxu0 %v2626_v7  ;;  %2156 = vmatprep.subr.mxu1 %v2626_v7 }
 0x2bc   : > { %2126 = vmatpush3.msra.mxu0 %v1247_v42  ;;  %2157 = vmatpush3.msra.mxu1 %v1365_v61  ;;  %v1520_v42 = vld [vmem:[#allocation14 + $0x138] sm:$0xff] }
 0x2bd   : > { %2127 = vmatprep.subr.mxu0 %v2626_v7  ;;  %2158 = vmatprep.subr.mxu1 %v2626_v7 }
 0x2be   : > { %2128 = vmatpush3.msra.mxu0 %v1246_v43  ;;  %2159 = vmatpush3.msra.mxu1 %v1364_v63  ;;  %v1519_v43 = vld [vmem:[#allocation14 + $0x130] sm:$0xff] }
 0x2bf   : > { %2129 = vmatprep.subr.mxu0 %v2626_v7  ;;  %2160 = vmatprep.subr.mxu1 %v2626_v7 }
 0x2c0   : > { %2130 = vmatpush3.msra.mxu0 %v1245_v44  ;;  %2161 = vmatpush3.msra.mxu1 %v1363_v2  ;;  %v1518_v44 = vld [vmem:[#allocation14 + $0x128] sm:$0xff] }
 0x2c1   : > { %2131 = vmatprep.subr.mxu0 %v2626_v7  ;;  %2162 = vmatprep.subr.mxu1 %v2626_v7 }
 0x2c2   : > { %2132 = vmatpush3.msra.mxu0 %v1244_v45  ;;  %2163 = vmatpush3.msra.mxu1 %v1362_v4  ;;  %v1517_v45 = vld [vmem:[#allocation14 + $0x120] sm:$0xff] }
 0x2c3   : > { %2133 = vmatprep.subr.mxu0 %v2626_v7  ;;  %2164 = vmatprep.subr.mxu1 %v2626_v7 }
 0x2c4   : > { %2134 = vmatpush3.msra.mxu0 %v1243_v0  ;;  %2165 = vmatpush3.msra.mxu1 %v1361_v6  ;;  %v1516_v0 = vld [vmem:[#allocation14 + $0x118] sm:$0xff] }
 0x2c5   : > { %2135 = vmatprep.subr.mxu0 %v2626_v7  ;;  %2166 = vmatprep.subr.mxu1 %v2626_v7 }
 0x2c6   : > { %2136 = vmatpush3.msra.mxu0 %v1242_v46  ;;  %2167 = vmatpush3.msra.mxu1 %v1360_v9  ;;  %v1515_v46 = vld [vmem:[#allocation14 + $0x110] sm:$0xff] }
 0x2c7   : > { %2137 = vmatprep.subr.mxu0 %v2626_v7  ;;  %2168 = vmatprep.subr.mxu1 %v2626_v7 }
 0x2c8   : > { %2138 = vmatpush3.msra.mxu0 %v1241_v47  ;;  %2169 = vmatpush3.msra.mxu1 %v1359_v11  ;;  %v1514_v47 = vld [vmem:[#allocation14 + $0x108] sm:$0xff] }
 0x2c9   : > { %2139 = vmatprep.subr.mxu0 %v2626_v7  ;;  %2170 = vmatprep.subr.mxu1 %v2626_v7 }
 0x2ca   : > { %2140 = vmatpush3.msra.mxu0 %v1240_v48  ;;  %2171 = vmatpush3.msra.mxu1 %v1358_v13  ;;  %v1513_v48 = vld [vmem:[#allocation14 + $0x100] sm:$0xff] }
 0x2cb   : > { %2141 = vmatprep.subr.mxu0 %v2626_v7  ;;  %2172 = vmatprep.subr.mxu1 %v2626_v7 }
 0x2cc   : > { %2142 = vmatpush3.msra.mxu0 %v1239_v49  ;;  %2173 = vmatpush3.msra.mxu1 %v1357_v15 }
 0x2cd   : > { %2144 = vmatmul.mubr.f32.vlgmr.msra.gmra.mxu0 %v2930_v59  ;;  %2181 = vmatprep.subr.mxu0 %v2626_v7 }
 0x2ce   : > { %2213 = vmatprep.mubr.msk.f32.mxu0 %vm2627_vm0, %v2626_v7  ;;  %2182 = vmatpush3.msra.mxu0 %v1352_v51 }
 0x2cf   : > { %2183 = vmatprep.subr.mxu0 %v2626_v7  ;;  %2174 = vmatprep.subr.mxu1 %v2626_v7 }
 0x2d0   : > { %2184 = vmatpush3.msra.mxu0 %v1351_v53  ;;  %2175 = vmatpush3.msra.mxu1 %v1356_v17 }
 0x2d1   : > { %2185 = vmatprep.subr.mxu0 %v2626_v7  ;;  %2176 = vmatprep.subr.mxu1 %v2626_v7 }
 0x2d2   : > { %2186 = vmatpush3.msra.mxu0 %v1350_v55  ;;  %2177 = vmatpush3.msra.mxu1 %v1355_v19  ;;  %v1777_v55 = vld [vmem:[%s3115_s8] ss:$0 sm:$0xff] }
 0x2d3   : > { %2187 = vmatprep.subr.mxu0 %v2626_v7  ;;  %2216 = vmatprep.subr.mxu1 %v2626_v7 }
 0x2d4   : > { %2188 = vmatpush3.msra.mxu0 %v1349_v57 }
 0x2d5   : > { %2189 = vmatprep.subr.mxu0 %v2626_v7 }
 0x2d6   : > { %2190 = vmatpush3.msra.mxu0 %v1348_v60 }
 0x2d7   : > { %2191 = vmatprep.subr.mxu0 %v2626_v7 }
 0x2d8   : > { %2192 = vmatpush3.msra.mxu0 %v1347_v62 }
 0x2d9   : > { %2193 = vmatprep.subr.mxu0 %v2626_v7 }
 0x2da   : > { %2194 = vmatpush3.msra.mxu0 %v1346_v1 }
 0x2db   : > { %2195 = vmatprep.subr.mxu0 %v2626_v7 }
 0x2dc   : > { %2196 = vmatpush3.msra.mxu0 %v1345_v3 }
 0x2dd   : > { %2197 = vmatprep.subr.mxu0 %v2626_v7 }
 0x2de   : > { %2198 = vmatpush3.msra.mxu0 %v1344_v5 }
 0x2df   : > { %2199 = vmatprep.subr.mxu0 %v2626_v7 }
 0x2e0   : > { %2200 = vmatpush3.msra.mxu0 %v1343_v8 }
 0x2e1   : > { %2201 = vmatprep.subr.mxu0 %v2626_v7 }
 0x2e2   : > { %2202 = vmatpush3.msra.mxu0 %v1342_v10 }
 0x2e3   : > { %2203 = vmatprep.subr.mxu0 %v2626_v7 }
 0x2e4   : > { %2204 = vmatpush3.msra.mxu0 %v1341_v12 }
 0x2e5   : > { %2205 = vmatprep.subr.mxu0 %v2626_v7 }
 0x2e6   : > { %2206 = vmatpush3.msra.mxu0 %v1340_v14 }
 0x2e7   : > { %2207 = vmatprep.subr.mxu0 %v2626_v7 }
 0x2e8   : > { %2208 = vmatpush3.msra.mxu0 %v1339_v16 }
 0x2e9   : > { %2209 = vmatprep.subr.mxu0 %v2626_v7 }
 0x2ea   : > { %2210 = vmatpush3.msra.mxu0 %v1338_v18 }
 0x2eb   : > { %2211 = vmatprep.subr.mxu0 %v2626_v7 }
 0x2ec   : > { %2212 = vmatpush3.msra.mxu0 %v1337_v20 }
 0x36c   : > { %v1163_v21 = vpop.f32.mrf.mxu0 }
 0x36e   : > { %v1233_v22 = vpop.f32.mrf.mxu1  ;;  %v2075_v23 = vpop.f32.mrf.mxu0 }
 0x36f   : > { %v1234_v25 = vadd.f32 %v1233_v22, %v1163_v21 }
 0x370   : > { %v2110_v24 = vpop.f32.mrf.mxu1 }
 0x38d   : > { %v1321_v26 = vpop.f32.mrf.mxu0 }
 0x38e   : > { %v1325_v28 = vadd.f32 %v1321_v26, %v1234_v25 }
 0x38f   : > { %v2145_v29 = vpop.f32.mrf.mxu0 }
 0x390   : > { %v1333_v30 = vadd.f32 %v1776_v27, %v1325_v28 }
 0x392   : > { %v1334_v31 = vmax.f32 %v1333_v30, 0.0 }
 0x394   : > { %1335 = vst [vmem:[#allocation5 + $0x8] sm:$0xff] %v1334_v31 }
 0x39b   : > { %v1353_v33 = vld [vmem:[#allocation5 + $0x6] sm:$0xff] }
 0x39c   : > { %v1336_v34 = vld [vmem:[#allocation5 + $0x4] sm:$0xff]  ;;  %2179 = vmatmul.mubr.f32.vlgmr.msra.gmra.mxu1 %v1353_v33 }
 0x39d   : > { %2214 = vmatmul.mubr.f32.vlgmr.msra.gmra.mxu0 %v1336_v34  ;;  %2217 = vmatpush3.msra.mxu1 %v1528_v32 }
 0x39e   : > { %2248 = vmatprep.mubr.msk.f32.mxu1 %vm2627_vm0, %v2626_v7  ;;  %2218 = vmatprep.subr.mxu1 %v2626_v7 }
 0x39f   : > { %2219 = vmatpush3.msra.mxu1 %v1527_v35 }
 0x3a0   : > { %2220 = vmatprep.subr.mxu1 %v2626_v7 }
 0x3a1   : > { %2221 = vmatpush3.msra.mxu1 %v1526_v36 }
 0x3a2   : > { %2222 = vmatprep.subr.mxu1 %v2626_v7 }
 0x3a3   : > { %2223 = vmatpush3.msra.mxu1 %v1525_v37 }
 0x3a4   : > { %2224 = vmatprep.subr.mxu1 %v2626_v7 }
 0x3a5   : > { %2225 = vmatpush3.msra.mxu1 %v1524_v38 }
 0x3a6   : > { %2226 = vmatprep.subr.mxu1 %v2626_v7 }
 0x3a7   : > { %2227 = vmatpush3.msra.mxu1 %v1523_v39 }
 0x3a8   : > { %2228 = vmatprep.subr.mxu1 %v2626_v7 }
 0x3a9   : > { %2229 = vmatpush3.msra.mxu1 %v1522_v40 }
 0x3aa   : > { %2230 = vmatprep.subr.mxu1 %v2626_v7 }
 0x3ab   : > { %2231 = vmatpush3.msra.mxu1 %v1521_v41 }
 0x3ac   : > { %2232 = vmatprep.subr.mxu1 %v2626_v7 }
 0x3ad   : > { %2233 = vmatpush3.msra.mxu1 %v1520_v42 }
 0x3ae   : > { %2234 = vmatprep.subr.mxu1 %v2626_v7 }
 0x3af   : > { %2235 = vmatpush3.msra.mxu1 %v1519_v43 }
 0x3b0   : > { %2236 = vmatprep.subr.mxu1 %v2626_v7 }
 0x3b1   : > { %2237 = vmatpush3.msra.mxu1 %v1518_v44 }
 0x3b2   : > { %2238 = vmatprep.subr.mxu1 %v2626_v7 }
 0x3b3   : > { %2239 = vmatpush3.msra.mxu1 %v1517_v45 }
 0x3b4   : > { %2240 = vmatprep.subr.mxu1 %v2626_v7 }
 0x3b5   : > { %2241 = vmatpush3.msra.mxu1 %v1516_v0 }
 0x3b6   : > { %2242 = vmatprep.subr.mxu1 %v2626_v7 }
 0x3b7   : > { %2243 = vmatpush3.msra.mxu1 %v1515_v46 }
 0x3b8   : > { %2244 = vmatprep.subr.mxu1 %v2626_v7 }
 0x3b9   : > { %2245 = vmatpush3.msra.mxu1 %v1514_v47 }
 0x3ba   : > { %2246 = vmatprep.subr.mxu1 %v2626_v7 }
 0x3bb   : > { %2247 = vmatpush3.msra.mxu1 %v1513_v48 }
 0x3bc   : > { %2249 = vmatmul.mubr.f32.vlgmr.msra.gmra.mxu1 %v1334_v31 }
 0x45c   : > { %v1437_v49 = vpop.f32.mrf.mxu1 }
 0x45d   : > { %v1507_v50 = vpop.f32.mrf.mxu0 }
 0x45e   : > { %v2180_v51 = vpop.f32.mrf.mxu1  ;;  %v1508_v53 = vadd.f32 %v1507_v50, %v1437_v49 }
 0x45f   : > { %v2215_v52 = vpop.f32.mrf.mxu0 }
 0x47c   : > { %v1595_v54 = vpop.f32.mrf.mxu1 }
 0x47d   : > { %v1599_v56 = vadd.f32 %v1595_v54, %v1508_v53 }
 0x47e   : > { %v2250_v57 = vpop.f32.mrf.mxu1 }
 0x47f   : > { %v1607_v7 = vadd.f32 %v1777_v55, %v1599_v56 }
 0x481   : > { %v1608_v58 = vmax.f32 %v1607_v7, 0.0 }
 0x483   : > { %v1609_v60 = vadd.f32 %v1608_v58, %v2930_v59 }
 0x485   : > { %v1611_v61 = vmul.f32 0.01, %v1609_v60  ;;  %vm1610_vm2 = vcmp.ge.f32.partialorder %v1609_v60, 0.0 }
 0x487   : > { %v1612_v62 = vsel %vm1610_vm2, %v1609_v60, %v1611_v61 }
 0x488   : > { %1613 = vst [vmem:[%s2854_s30] sm:$0xff] %v1612_v62 }
 0x489   : > { %2523 = shalt.err (!%p2520_p7)
}
 0x48a   : > { %s2524_s30 = scalar_lea.hbm %s3059_s15, 128  ;;  %s2528_s28 = scalar_lea.hbm %s3146_s9, 512 }
 0x48b   : > { %p2525_p8 = scmp.ne.s32.totalorder %s3059_s15, %s2524_s30  ;;  %p2529_p13 = scmp.lt.s32.totalorder %s3059_s15, %s3146_s9 }
 0x48c   : > { %p2530_p3 = scmp.lt.s32.totalorder %s2528_s28, %s2524_s30 }
 0x48d   : > { %p2526_p5 = pnand %p2525_p8, %p3147_p10 }
 0x48e   : > { %p2531_p9 = por %p2530_p3, %p2529_p13 }
 0x48f   : > { %p2527_p11 = pneg %p2526_p5 }
 0x491   : > { %p2532_p1 = pnand %p2531_p9, %p2527_p11 }
 0x493   : > { %2535 = shalt.err (!%p2532_p1)
}
 0x494   : > { %2269 = dma.vmem_to_hbm [thread:$0]  (%p3147_p10), %s1631_s7, 128, %s3059_s15, %s1615_s13  }
 0x495 PF: > { %s3148_s17 = sld [smem:[#allocation20_spill]]  ;;  %p2301_p12 = scmp.ge.s32.totalorder %s2614_s16, 2 }
 0x496   : > { %p3149_p0 = scmp.ne.s32.totalorder %s3144_s26, 0 }
 0x498   : > { %p2289_p6 = pnand %p2301_p12, %p3149_p0 }
 0x49a   : > { %p2290_p2 = pneg %p2289_p6 }
 0x49b   : > { %s1642_s1 = sand.u32 1, %s3148_s17  }
 0x49c   : > { %s1643_s5 = scalar_lea.sflag [#allocation8], %s1642_s1 }
 0x49d   : > { %2581 = dma.done.wait (%p2290_p2), %s1643_s5, 128  }
 0x49e   : > { %2583 = vsyncadd (%p2290_p2), %s1643_s5, 4294967168  ;;  %s27_s16 = sadd.s32 1, %s2614_s16   ;;  %s3150_s13 = sld [smem:[#allocation21_spill]] }
 0x49f   : > { %p24_p4 = scmp.ge.s32.totalorder %s27_s16, 6   ;;  %s3151_s24 = sld [smem:[#allocation22_spill]] }
 0x4a0   : > { %s3152_s15 = sld [smem:[#allocation23_spill]]  ;;  %s3153_s30 = smov %s2590_s10 }
 0x4a1   : > { %s3154_s10 = smov %s2594_s11  ;;  %s3155_s11 = smov %s2816_s3 }
 0x4a2   : > { %s3156_s12 = smov %s2606_s14  ;;  %26 = sbr.rel (!%p24_p4) target bundleno = 15 (0xf), region = 141 }
 0x4a5   : > { %s3157_s14 = smov %s3151_s24 }
 0x4a7   :  { %1648 = vsyncpa [#allocation7], 1 }
 0x4a8   :  { %1650 = vsyncpa [#allocation7 + $0x1], 1 }
 0x4a9   :  { %1651 = vsyncpa [#allocation10], 1 }
 0x4aa   :  { %1652 = vsyncpa [#allocation13], 1 }
 0x4ab   :  { %1653 = vsyncpa [#allocation8], 1 }
 0x4ac   :  { %1655 = vsyncpa [#allocation8 + $0x1], 1 }

</bundles_post_ra>
